<compile_context>
chip_gen: v7x
topology: tpu7x:2x2x1
jax: 0.10.0
libtpu: 0.0.40
codegen_flags: <defaults>
</compile_context>

<pallas_src>
import jax
import jax.numpy as jnp
from jax.experimental import pallas as pl
from jax.experimental.pallas import tpu as pltpu


# ----------------------------------------------------------------------------
# Single fused kernel.
# Gate order follows torch.nn.GRU: [r, z, n], concatenated along the lane axis.
#   e_seq (B,Le)  d_seq (B,Ld)  d_mask (B*Ld,1)   [mask rows are batch-major]
#   per-GRU params: we/be (1,In), wih (In,3H), whh (H,3H), bih/bhh (1,3H)
#   head: wout (H,O), bout (1,O)     ->  out (B, Ld, O)
#   scratch: d_scr (B*Ld, H) VMEM -- decoder hidden states, batch-major rows.
# ----------------------------------------------------------------------------
def fused_seq2seq_kernel(e_seq_ref, d_seq_ref, d_mask_ref,
                         we_e_ref, be_e_ref, wih_e_ref, whh_e_ref, bih_e_ref, bhh_e_ref,
                         we_d_ref, be_d_ref, wih_d_ref, whh_d_ref, bih_d_ref, bhh_d_ref,
                         wout_ref, bout_ref, out_ref, d_scr_ref):
    f32 = jnp.float32
    B, Le = e_seq_ref.shape
    Ld = d_seq_ref.shape[1]
    H = whh_e_ref.shape[0]
    H2 = 2 * H

    def gru_consts(we_ref, be_ref, wih_ref, bih_ref):
        # Fold Linear(1, In) embedding into the (fused) input path:
        #   gi(x) = (x*we + be) @ Wih + bih  ==  x * u + c      (rank-1)
        we = we_ref[...]                               # (1, In)
        be = be_ref[...]                               # (1, In)
        wih = wih_ref[...]                             # (In, 3H)
        u = jnp.dot(we, wih, preferred_element_type=f32)                   # (1, 3H)
        c = jnp.dot(be, wih, preferred_element_type=f32) + bih_ref[...]    # (1, 3H)
        return u, c

    def gru_cell(h, x_t, u, c, whh, bhh):
        # Single (B,H)@(H,3H) matmul on the serial chain (1 MXU push / step).
        gh = jnp.dot(h, whh, preferred_element_type=f32) + bhh             # (B, 3H)
        # Input path: no h dependence -> VPU filler inside the step.
        gi = x_t * u + c                                                   # (B, 3H)
        # One sigmoid over the fused [r|z] lanes, tanh for n.
        rz = jax.nn.sigmoid(gi[:, :H2] + gh[:, :H2])                       # (B, 2H)
        r = rz[:, :H]
        z = rz[:, H:]
        n = jnp.tanh(gi[:, H2:] + r * gh[:, H2:])
        return (1.0 - z) * n + z * h

    h = jnp.zeros((B, H), f32)

    # ---- Encoder: only the final hidden state is needed (no per-step stores).
    u_e, c_e = gru_consts(we_e_ref, be_e_ref, wih_e_ref, bih_e_ref)
    whh_e = whh_e_ref[...]
    bhh_e = bhh_e_ref[...]
    e_seq = e_seq_ref[...]                             # (B, Le), loaded once
    for t in range(Le):                                # fully unrolled (static)
        h = gru_cell(h, e_seq[:, t:t + 1], u_e, c_e, whh_e, bhh_e)

    # ---- Decoder: initialised with encoder final hidden state; stage every
    # hidden state into VMEM scratch (batch-major rows: row = b*Ld + t).
    u_d, c_d = gru_consts(we_d_ref, be_d_ref, wih_d_ref, bih_d_ref)
    whh_d = whh_d_ref[...]
    bhh_d = bhh_d_ref[...]
    d_seq = d_seq_ref[...]                             # (B, Ld)
    for t in range(Ld):                                # fully unrolled (static)
        h = gru_cell(h, d_seq[:, t:t + 1], u_d, c_d, whh_d, bhh_d)
        for b in range(B):                             # off-critical-path stores
            d_scr_ref[pl.ds(b * Ld + t, 1), :] = h[b:b + 1, :]

    # ---- Head: one slab matmul, mask, per-batch softmax over the seq axis
    # (each batch = one 8-sublane group since Ld == 8), exact normalization.
    wout = wout_ref[...]                               # (H, O)
    bout = bout_ref[...]                               # (1, O)
    slab = d_scr_ref[...]                              # (B*Ld, H)
    logits = jnp.dot(slab, wout, preferred_element_type=f32) + bout        # (B*Ld, O)
    masked = logits * d_mask_ref[...]                                      # (B*Ld, O)
    for b in range(B):
        mb = masked[b * Ld:(b + 1) * Ld, :]            # (Ld, O) static, vreg-aligned
        mx = jnp.max(mb, axis=0, keepdims=True)
        e = jnp.exp(mb - mx)
        den = jnp.sum(e, axis=0, keepdims=True)
        out_ref[b] = e / den                           # (Ld, O) store per batch


# ----------------------------------------------------------------------------
# Glue: parameters, masks, full forward.
# ----------------------------------------------------------------------------
def get_mask(lengths, max_len):
    # mask[b, t] = 1.0 if lengths[b] >= t+1 else 0.0  (same as torch get_mask)
    rng = jnp.arange(1, max_len + 1, dtype=jnp.float32)[None, :]
    return (lengths.astype(jnp.float32)[:, None] >= rng).astype(jnp.float32)


def init_params(key, E, D, H, O):
    ks = jax.random.split(key, 14)
    f32 = jnp.float32
    n = lambda k, s, sc=0.2: (sc * jax.random.normal(k, s)).astype(f32)
    return {
        # nn.Linear(1, E) / nn.Linear(1, D) embeddings (weight stored as (1, In))
        "we_e": n(ks[0], (1, E)), "be_e": n(ks[1], (1, E)),
        "we_d": n(ks[2], (1, D)), "be_d": n(ks[3], (1, D)),
        # encoder GRU, gates fused along lanes & pre-transposed: (In,3H)/(H,3H)
        "enc_wih": n(ks[4], (E, 3 * H)), "enc_whh": n(ks[5], (H, 3 * H)),
        "enc_bih": n(ks[6], (1, 3 * H)), "enc_bhh": n(ks[7], (1, 3 * H)),
        # decoder GRU
        "dec_wih": n(ks[8], (D, 3 * H)), "dec_whh": n(ks[9], (H, 3 * H)),
        "dec_bih": n(ks[10], (1, 3 * H)), "dec_bhh": n(ks[11], (1, 3 * H)),
        # output head nn.Linear(H, O), stored transposed (H, O)
        "lin_w_t": n(ks[12], (H, O), sc=(6.0 / (H + O)) ** 0.5),
        "lin_b": jnp.zeros((1, O), f32),
    }


def net_forward(params, e_in, d_in, e_len=None, d_len=None):
    B, Le = e_in.shape
    _, Ld = d_in.shape
    H = params["enc_whh"].shape[0]
    O = params["lin_w_t"].shape[-1]

    d_mask = get_mask(d_len, Ld) if d_len is not None else jnp.ones((B, Ld), jnp.float32)
    d_mask2 = d_mask.reshape(B * Ld, 1)                # batch-major rows, matches scratch

    # Single fused kernel; whole problem lives in VMEM (no grid / no batch
    # "parallel" axis at B=2 -- it would only add per-step pipeline overhead).
    # TODO(synk): if shapes are scaled up, add BlockSpecs over B/Ld and
    # re-derive tiles against the per-generation VMEM (64 MiB on v7x).
    return pl.pallas_call(
        fused_seq2seq_kernel,
        out_shape=jax.ShapeDtypeStruct((B, Ld, O), jnp.float32),
        scratch_shapes=[pltpu.VMEM((B * Ld, H), jnp.float32)],
    )(e_in.astype(jnp.float32), d_in.astype(jnp.float32), d_mask2,
      params["we_e"], params["be_e"], params["enc_wih"], params["enc_whh"],
      params["enc_bih"], params["enc_bhh"],
      params["we_d"], params["be_d"], params["dec_wih"], params["dec_whh"],
      params["dec_bih"], params["dec_bhh"],
      params["lin_w_t"], params["lin_b"])


# ----------------------------------------------------------------------------
# Pure-JAX reference (for correctness checking only).
# ----------------------------------------------------------------------------
def _gru_ref(seq, h0, we, be, wih, whh, bih, bhh):
    H = whh.shape[0]
    x = seq[:, :, None] * we[0] + be[0]                # (B, L, In)

    def step(h, xt):
        gi = xt @ wih + bih[0]                         # (B, 3H)
        gh = h @ whh + bhh[0]                          # (B, 3H)
        r = jax.nn.sigmoid(gi[:, :H] + gh[:, :H])
        z = jax.nn.sigmoid(gi[:, H:2 * H] + gh[:, H:2 * H])
        n = jnp.tanh(gi[:, 2 * H:] + r * gh[:, 2 * H:])
        h = (1.0 - z) * n + z * h
        return h, h

    h_last, outs = jax.lax.scan(step, h0, jnp.moveaxis(x, 1, 0))
    return jnp.moveaxis(outs, 0, 1), h_last


def net_forward_ref(params, e_in, d_in, e_len=None, d_len=None):
    B, _ = e_in.shape
    _, Ld = d_in.shape
    H = params["enc_whh"].shape[0]
    h0 = jnp.zeros((B, H), jnp.float32)
    _, e_h = _gru_ref(e_in, h0, params["we_e"], params["be_e"],
                      params["enc_wih"], params["enc_whh"],
                      params["enc_bih"], params["enc_bhh"])
    d_out, _ = _gru_ref(d_in, e_h, params["we_d"], params["be_d"],
                        params["dec_wih"], params["dec_whh"],
                        params["dec_bih"], params["dec_bhh"])
    logits = d_out @ params["lin_w_t"] + params["lin_b"][0]
    d_mask = get_mask(d_len, Ld) if d_len is not None else jnp.ones((B, Ld), jnp.float32)
    return jax.nn.softmax(logits * d_mask[:, :, None], axis=1)


if __name__ == "__main__":
    # Small shapes: batch=2, encoder/decoder seq len=8, embed=8, hidden=32, output=2
    B, Le, Ld = 2, 8, 8
    E, D, H, O = 8, 8, 32, 2

    key = jax.random.PRNGKey(0)
    k_p, k_e, k_d = jax.random.split(key, 3)
    params = init_params(k_p, E, D, H, O)

    e_in = jax.random.normal(k_e, (B, Le), jnp.float32)
    d_in = jax.random.normal(k_d, (B, Ld), jnp.float32)
    e_len = jnp.array([8, 6], jnp.int32)
    d_len = jnp.array([8, 5], jnp.int32)

    fwd = jax.jit(net_forward)
    out = jax.block_until_ready(fwd(params, e_in, d_in, e_len, d_len))

    assert out.shape == (B, Ld, O), out.shape
    assert bool(jnp.all(jnp.isfinite(out)))
    # softmax over dim=1 => per (batch, output_channel) sums along seq == 1
    sums = jnp.sum(out, axis=1)
    assert bool(jnp.allclose(sums, 1.0, atol=1e-5)), sums

    ref = net_forward_ref(params, e_in, d_in, e_len, d_len)
    assert bool(jnp.allclose(out, ref, atol=1e-4, rtol=1e-3)), float(jnp.max(jnp.abs(out - ref)))

    print("KERNEL_OK")
</pallas_src>

<mosaic_0001>
module attributes {stable_mosaic.version = 11 : i64} {
  func.func @fused_seq2seq_kernel(%arg0: memref<2x8xf32, #tpu.memory_space<vmem>>, %arg1: memref<2x8xf32, #tpu.memory_space<vmem>>, %arg2: memref<16x1xf32, #tpu.memory_space<vmem>>, %arg3: memref<1x8xf32, #tpu.memory_space<vmem>>, %arg4: memref<1x8xf32, #tpu.memory_space<vmem>>, %arg5: memref<8x96xf32, #tpu.memory_space<vmem>>, %arg6: memref<32x96xf32, #tpu.memory_space<vmem>>, %arg7: memref<1x96xf32, #tpu.memory_space<vmem>>, %arg8: memref<1x96xf32, #tpu.memory_space<vmem>>, %arg9: memref<1x8xf32, #tpu.memory_space<vmem>>, %arg10: memref<1x8xf32, #tpu.memory_space<vmem>>, %arg11: memref<8x96xf32, #tpu.memory_space<vmem>>, %arg12: memref<32x96xf32, #tpu.memory_space<vmem>>, %arg13: memref<1x96xf32, #tpu.memory_space<vmem>>, %arg14: memref<1x96xf32, #tpu.memory_space<vmem>>, %arg15: memref<32x2xf32, #tpu.memory_space<vmem>>, %arg16: memref<1x2xf32, #tpu.memory_space<vmem>>, %arg17: memref<2x8x2xf32, #tpu.memory_space<vmem>>, %arg18: memref<16x32xf32, #tpu.memory_space<vmem>>) attributes {dimension_semantics = [], scalar_prefetch = 0 : i64, scratch_operands = 1 : i64, tpu.core_type = #tpu.core_type<tc>} {
    %cst = arith.constant 0.000000e+00 : f32
    %0 = vector.broadcast %cst : f32 to vector<2x32xf32>
    %c0 = arith.constant 0 : index
    %c0_0 = arith.constant 0 : index
    %1 = vector.load %arg3[%c0, %c0_0] : memref<1x8xf32, #tpu.memory_space<vmem>>, vector<1x8xf32>
    %c0_1 = arith.constant 0 : index
    %c0_2 = arith.constant 0 : index
    %2 = vector.load %arg4[%c0_1, %c0_2] : memref<1x8xf32, #tpu.memory_space<vmem>>, vector<1x8xf32>
    %c0_3 = arith.constant 0 : index
    %c0_4 = arith.constant 0 : index
    %3 = vector.load %arg5[%c0_3, %c0_4] : memref<8x96xf32, #tpu.memory_space<vmem>>, vector<8x96xf32>
    %cst_5 = arith.constant dense<0.000000e+00> : vector<1x96xf32>
    %4 = tpu.matmul %1, %3, %cst_5 {dimension_numbers = #tpu.dot_dimension_numbers<[1], [0], [0], [1], [0, 0, 1, 1], [], []>} : vector<1x8xf32>, vector<8x96xf32>, vector<1x96xf32> -> vector<1x96xf32>
    %cst_6 = arith.constant dense<0.000000e+00> : vector<1x96xf32>
    %5 = tpu.matmul %2, %3, %cst_6 {dimension_numbers = #tpu.dot_dimension_numbers<[1], [0], [0], [1], [0, 0, 1, 1], [], []>} : vector<1x8xf32>, vector<8x96xf32>, vector<1x96xf32> -> vector<1x96xf32>
    %c0_7 = arith.constant 0 : index
    %c0_8 = arith.constant 0 : index
    %6 = vector.load %arg7[%c0_7, %c0_8] : memref<1x96xf32, #tpu.memory_space<vmem>>, vector<1x96xf32>
    %7 = arith.addf %5, %6 : vector<1x96xf32>
    %c0_9 = arith.constant 0 : index
    %c0_10 = arith.constant 0 : index
    %8 = vector.load %arg6[%c0_9, %c0_10] : memref<32x96xf32, #tpu.memory_space<vmem>>, vector<32x96xf32>
    %c0_11 = arith.constant 0 : index
    %c0_12 = arith.constant 0 : index
    %9 = vector.load %arg8[%c0_11, %c0_12] : memref<1x96xf32, #tpu.memory_space<vmem>>, vector<1x96xf32>
    %c0_13 = arith.constant 0 : index
    %c0_14 = arith.constant 0 : index
    %10 = vector.load %arg0[%c0_13, %c0_14] : memref<2x8xf32, #tpu.memory_space<vmem>>, vector<2x8xf32>
    %11 = vector.extract_strided_slice %10 {offsets = [0, 0], sizes = [2, 1], strides = [1, 1]} : vector<2x8xf32> to vector<2x1xf32>
    %cst_15 = arith.constant dense<0.000000e+00> : vector<2x96xf32>
    %12 = tpu.matmul %0, %8, %cst_15 {dimension_numbers = #tpu.dot_dimension_numbers<[1], [0], [0], [1], [0, 0, 1, 1], [], []>} : vector<2x32xf32>, vector<32x96xf32>, vector<2x96xf32> -> vector<2x96xf32>
    %13 = vector.broadcast %9 : vector<1x96xf32> to vector<2x96xf32>
    %14 = arith.addf %12, %13 : vector<2x96xf32>
    %15 = vector.broadcast %11 : vector<2x1xf32> to vector<2x96xf32>
    %16 = vector.broadcast %4 : vector<1x96xf32> to vector<2x96xf32>
    %17 = arith.mulf %15, %16 : vector<2x96xf32>
    %18 = vector.broadcast %7 : vector<1x96xf32> to vector<2x96xf32>
    %19 = arith.addf %17, %18 : vector<2x96xf32>
    %20 = vector.extract_strided_slice %19 {offsets = [0, 0], sizes = [2, 64], strides = [1, 1]} : vector<2x96xf32> to vector<2x64xf32>
    %21 = vector.extract_strided_slice %14 {offsets = [0, 0], sizes = [2, 64], strides = [1, 1]} : vector<2x96xf32> to vector<2x64xf32>
    %22 = arith.addf %20, %21 : vector<2x64xf32>
    %23 = arith.negf %22 : vector<2x64xf32>
    %24 = math.exp %23 : vector<2x64xf32>
    %cst_16 = arith.constant 1.000000e+00 : f32
    %25 = vector.broadcast %cst_16 : f32 to vector<2x64xf32>
    %26 = arith.addf %25, %24 : vector<2x64xf32>
    %27 = arith.divf %25, %26 : vector<2x64xf32>
    %28 = vector.extract_strided_slice %27 {offsets = [0, 0], sizes = [2, 32], strides = [1, 1]} : vector<2x64xf32> to vector<2x32xf32>
    %29 = vector.extract_strided_slice %27 {offsets = [0, 32], sizes = [2, 32], strides = [1, 1]} : vector<2x64xf32> to vector<2x32xf32>
    %30 = vector.extract_strided_slice %19 {offsets = [0, 64], sizes = [2, 32], strides = [1, 1]} : vector<2x96xf32> to vector<2x32xf32>
    %31 = vector.extract_strided_slice %14 {offsets = [0, 64], sizes = [2, 32], strides = [1, 1]} : vector<2x96xf32> to vector<2x32xf32>
    %32 = arith.mulf %28, %31 : vector<2x32xf32>
    %33 = arith.addf %30, %32 : vector<2x32xf32>
    %34 = math.tanh %33 : vector<2x32xf32>
    %cst_17 = arith.constant 1.000000e+00 : f32
    %35 = vector.broadcast %cst_17 : f32 to vector<2x32xf32>
    %36 = arith.subf %35, %29 : vector<2x32xf32>
    %37 = arith.mulf %36, %34 : vector<2x32xf32>
    %38 = arith.mulf %29, %0 : vector<2x32xf32>
    %39 = arith.addf %37, %38 : vector<2x32xf32>
    %40 = vector.extract_strided_slice %10 {offsets = [0, 1], sizes = [2, 1], strides = [1, 1]} : vector<2x8xf32> to vector<2x1xf32>
    %cst_18 = arith.constant dense<0.000000e+00> : vector<2x96xf32>
    %41 = tpu.matmul %39, %8, %cst_18 {dimension_numbers = #tpu.dot_dimension_numbers<[1], [0], [0], [1], [0, 0, 1, 1], [], []>} : vector<2x32xf32>, vector<32x96xf32>, vector<2x96xf32> -> vector<2x96xf32>
    %42 = vector.broadcast %9 : vector<1x96xf32> to vector<2x96xf32>
    %43 = arith.addf %41, %42 : vector<2x96xf32>
    %44 = vector.broadcast %40 : vector<2x1xf32> to vector<2x96xf32>
    %45 = vector.broadcast %4 : vector<1x96xf32> to vector<2x96xf32>
    %46 = arith.mulf %44, %45 : vector<2x96xf32>
    %47 = vector.broadcast %7 : vector<1x96xf32> to vector<2x96xf32>
    %48 = arith.addf %46, %47 : vector<2x96xf32>
    %49 = vector.extract_strided_slice %48 {offsets = [0, 0], sizes = [2, 64], strides = [1, 1]} : vector<2x96xf32> to vector<2x64xf32>
    %50 = vector.extract_strided_slice %43 {offsets = [0, 0], sizes = [2, 64], strides = [1, 1]} : vector<2x96xf32> to vector<2x64xf32>
    %51 = arith.addf %49, %50 : vector<2x64xf32>
    %52 = arith.negf %51 : vector<2x64xf32>
    %53 = math.exp %52 : vector<2x64xf32>
    %cst_19 = arith.constant 1.000000e+00 : f32
    %54 = vector.broadcast %cst_19 : f32 to vector<2x64xf32>
    %55 = arith.addf %54, %53 : vector<2x64xf32>
    %56 = arith.divf %54, %55 : vector<2x64xf32>
    %57 = vector.extract_strided_slice %56 {offsets = [0, 0], sizes = [2, 32], strides = [1, 1]} : vector<2x64xf32> to vector<2x32xf32>
    %58 = vector.extract_strided_slice %56 {offsets = [0, 32], sizes = [2, 32], strides = [1, 1]} : vector<2x64xf32> to vector<2x32xf32>
    %59 = vector.extract_strided_slice %48 {offsets = [0, 64], sizes = [2, 32], strides = [1, 1]} : vector<2x96xf32> to vector<2x32xf32>
    %60 = vector.extract_strided_slice %43 {offsets = [0, 64], sizes = [2, 32], strides = [1, 1]} : vector<2x96xf32> to vector<2x32xf32>
    %61 = arith.mulf %57, %60 : vector<2x32xf32>
    %62 = arith.addf %59, %61 : vector<2x32xf32>
    %63 = math.tanh %62 : vector<2x32xf32>
    %cst_20 = arith.constant 1.000000e+00 : f32
    %64 = vector.broadcast %cst_20 : f32 to vector<2x32xf32>
    %65 = arith.subf %64, %58 : vector<2x32xf32>
    %66 = arith.mulf %65, %63 : vector<2x32xf32>
    %67 = arith.mulf %58, %39 : vector<2x32xf32>
    %68 = arith.addf %66, %67 : vector<2x32xf32>
    %69 = vector.extract_strided_slice %10 {offsets = [0, 2], sizes = [2, 1], strides = [1, 1]} : vector<2x8xf32> to vector<2x1xf32>
    %cst_21 = arith.constant dense<0.000000e+00> : vector<2x96xf32>
    %70 = tpu.matmul %68, %8, %cst_21 {dimension_numbers = #tpu.dot_dimension_numbers<[1], [0], [0], [1], [0, 0, 1, 1], [], []>} : vector<2x32xf32>, vector<32x96xf32>, vector<2x96xf32> -> vector<2x96xf32>
    %71 = vector.broadcast %9 : vector<1x96xf32> to vector<2x96xf32>
    %72 = arith.addf %70, %71 : vector<2x96xf32>
    %73 = vector.broadcast %69 : vector<2x1xf32> to vector<2x96xf32>
    %74 = vector.broadcast %4 : vector<1x96xf32> to vector<2x96xf32>
    %75 = arith.mulf %73, %74 : vector<2x96xf32>
    %76 = vector.broadcast %7 : vector<1x96xf32> to vector<2x96xf32>
    %77 = arith.addf %75, %76 : vector<2x96xf32>
    %78 = vector.extract_strided_slice %77 {offsets = [0, 0], sizes = [2, 64], strides = [1, 1]} : vector<2x96xf32> to vector<2x64xf32>
    %79 = vector.extract_strided_slice %72 {offsets = [0, 0], sizes = [2, 64], strides = [1, 1]} : vector<2x96xf32> to vector<2x64xf32>
    %80 = arith.addf %78, %79 : vector<2x64xf32>
    %81 = arith.negf %80 : vector<2x64xf32>
    %82 = math.exp %81 : vector<2x64xf32>
    %cst_22 = arith.constant 1.000000e+00 : f32
    %83 = vector.broadcast %cst_22 : f32 to vector<2x64xf32>
    %84 = arith.addf %83, %82 : vector<2x64xf32>
    %85 = arith.divf %83, %84 : vector<2x64xf32>
    %86 = vector.extract_strided_slice %85 {offsets = [0, 0], sizes = [2, 32], strides = [1, 1]} : vector<2x64xf32> to vector<2x32xf32>
    %87 = vector.extract_strided_slice %85 {offsets = [0, 32], sizes = [2, 32], strides = [1, 1]} : vector<2x64xf32> to vector<2x32xf32>
    %88 = vector.extract_strided_slice %77 {offsets = [0, 64], sizes = [2, 32], strides = [1, 1]} : vector<2x96xf32> to vector<2x32xf32>
    %89 = vector.extract_strided_slice %72 {offsets = [0, 64], sizes = [2, 32], strides = [1, 1]} : vector<2x96xf32> to vector<2x32xf32>
    %90 = arith.mulf %86, %89 : vector<2x32xf32>
    %91 = arith.addf %88, %90 : vector<2x32xf32>
    %92 = math.tanh %91 : vector<2x32xf32>
    %cst_23 = arith.constant 1.000000e+00 : f32
    %93 = vector.broadcast %cst_23 : f32 to vector<2x32xf32>
    %94 = arith.subf %93, %87 : vector<2x32xf32>
    %95 = arith.mulf %94, %92 : vector<2x32xf32>
    %96 = arith.mulf %87, %68 : vector<2x32xf32>
    %97 = arith.addf %95, %96 : vector<2x32xf32>
    %98 = vector.extract_strided_slice %10 {offsets = [0, 3], sizes = [2, 1], strides = [1, 1]} : vector<2x8xf32> to vector<2x1xf32>
    %cst_24 = arith.constant dense<0.000000e+00> : vector<2x96xf32>
    %99 = tpu.matmul %97, %8, %cst_24 {dimension_numbers = #tpu.dot_dimension_numbers<[1], [0], [0], [1], [0, 0, 1, 1], [], []>} : vector<2x32xf32>, vector<32x96xf32>, vector<2x96xf32> -> vector<2x96xf32>
    %100 = vector.broadcast %9 : vector<1x96xf32> to vector<2x96xf32>
    %101 = arith.addf %99, %100 : vector<2x96xf32>
    %102 = vector.broadcast %98 : vector<2x1xf32> to vector<2x96xf32>
    %103 = vector.broadcast %4 : vector<1x96xf32> to vector<2x96xf32>
    %104 = arith.mulf %102, %103 : vector<2x96xf32>
    %105 = vector.broadcast %7 : vector<1x96xf32> to vector<2x96xf32>
    %106 = arith.addf %104, %105 : vector<2x96xf32>
    %107 = vector.extract_strided_slice %106 {offsets = [0, 0], sizes = [2, 64], strides = [1, 1]} : vector<2x96xf32> to vector<2x64xf32>
    %108 = vector.extract_strided_slice %101 {offsets = [0, 0], sizes = [2, 64], strides = [1, 1]} : vector<2x96xf32> to vector<2x64xf32>
    %109 = arith.addf %107, %108 : vector<2x64xf32>
    %110 = arith.negf %109 : vector<2x64xf32>
    %111 = math.exp %110 : vector<2x64xf32>
    %cst_25 = arith.constant 1.000000e+00 : f32
    %112 = vector.broadcast %cst_25 : f32 to vector<2x64xf32>
    %113 = arith.addf %112, %111 : vector<2x64xf32>
    %114 = arith.divf %112, %113 : vector<2x64xf32>
    %115 = vector.extract_strided_slice %114 {offsets = [0, 0], sizes = [2, 32], strides = [1, 1]} : vector<2x64xf32> to vector<2x32xf32>
    %116 = vector.extract_strided_slice %114 {offsets = [0, 32], sizes = [2, 32], strides = [1, 1]} : vector<2x64xf32> to vector<2x32xf32>
    %117 = vector.extract_strided_slice %106 {offsets = [0, 64], sizes = [2, 32], strides = [1, 1]} : vector<2x96xf32> to vector<2x32xf32>
    %118 = vector.extract_strided_slice %101 {offsets = [0, 64], sizes = [2, 32], strides = [1, 1]} : vector<2x96xf32> to vector<2x32xf32>
    %119 = arith.mulf %115, %118 : vector<2x32xf32>
    %120 = arith.addf %117, %119 : vector<2x32xf32>
    %121 = math.tanh %120 : vector<2x32xf32>
    %cst_26 = arith.constant 1.000000e+00 : f32
    %122 = vector.broadcast %cst_26 : f32 to vector<2x32xf32>
    %123 = arith.subf %122, %116 : vector<2x32xf32>
    %124 = arith.mulf %123, %121 : vector<2x32xf32>
    %125 = arith.mulf %116, %97 : vector<2x32xf32>
    %126 = arith.addf %124, %125 : vector<2x32xf32>
    %127 = vector.extract_strided_slice %10 {offsets = [0, 4], sizes = [2, 1], strides = [1, 1]} : vector<2x8xf32> to vector<2x1xf32>
    %cst_27 = arith.constant dense<0.000000e+00> : vector<2x96xf32>
    %128 = tpu.matmul %126, %8, %cst_27 {dimension_numbers = #tpu.dot_dimension_numbers<[1], [0], [0], [1], [0, 0, 1, 1], [], []>} : vector<2x32xf32>, vector<32x96xf32>, vector<2x96xf32> -> vector<2x96xf32>
    %129 = vector.broadcast %9 : vector<1x96xf32> to vector<2x96xf32>
    %130 = arith.addf %128, %129 : vector<2x96xf32>
    %131 = vector.broadcast %127 : vector<2x1xf32> to vector<2x96xf32>
    %132 = vector.broadcast %4 : vector<1x96xf32> to vector<2x96xf32>
    %133 = arith.mulf %131, %132 : vector<2x96xf32>
    %134 = vector.broadcast %7 : vector<1x96xf32> to vector<2x96xf32>
    %135 = arith.addf %133, %134 : vector<2x96xf32>
    %136 = vector.extract_strided_slice %135 {offsets = [0, 0], sizes = [2, 64], strides = [1, 1]} : vector<2x96xf32> to vector<2x64xf32>
    %137 = vector.extract_strided_slice %130 {offsets = [0, 0], sizes = [2, 64], strides = [1, 1]} : vector<2x96xf32> to vector<2x64xf32>
    %138 = arith.addf %136, %137 : vector<2x64xf32>
    %139 = arith.negf %138 : vector<2x64xf32>
    %140 = math.exp %139 : vector<2x64xf32>
    %cst_28 = arith.constant 1.000000e+00 : f32
    %141 = vector.broadcast %cst_28 : f32 to vector<2x64xf32>
    %142 = arith.addf %141, %140 : vector<2x64xf32>
    %143 = arith.divf %141, %142 : vector<2x64xf32>
    %144 = vector.extract_strided_slice %143 {offsets = [0, 0], sizes = [2, 32], strides = [1, 1]} : vector<2x64xf32> to vector<2x32xf32>
    %145 = vector.extract_strided_slice %143 {offsets = [0, 32], sizes = [2, 32], strides = [1, 1]} : vector<2x64xf32> to vector<2x32xf32>
    %146 = vector.extract_strided_slice %135 {offsets = [0, 64], sizes = [2, 32], strides = [1, 1]} : vector<2x96xf32> to vector<2x32xf32>
    %147 = vector.extract_strided_slice %130 {offsets = [0, 64], sizes = [2, 32], strides = [1, 1]} : vector<2x96xf32> to vector<2x32xf32>
    %148 = arith.mulf %144, %147 : vector<2x32xf32>
    %149 = arith.addf %146, %148 : vector<2x32xf32>
    %150 = math.tanh %149 : vector<2x32xf32>
    %cst_29 = arith.constant 1.000000e+00 : f32
    %151 = vector.broadcast %cst_29 : f32 to vector<2x32xf32>
    %152 = arith.subf %151, %145 : vector<2x32xf32>
    %153 = arith.mulf %152, %150 : vector<2x32xf32>
    %154 = arith.mulf %145, %126 : vector<2x32xf32>
    %155 = arith.addf %153, %154 : vector<2x32xf32>
    %156 = vector.extract_strided_slice %10 {offsets = [0, 5], sizes = [2, 1], strides = [1, 1]} : vector<2x8xf32> to vector<2x1xf32>
    %cst_30 = arith.constant dense<0.000000e+00> : vector<2x96xf32>
    %157 = tpu.matmul %155, %8, %cst_30 {dimension_numbers = #tpu.dot_dimension_numbers<[1], [0], [0], [1], [0, 0, 1, 1], [], []>} : vector<2x32xf32>, vector<32x96xf32>, vector<2x96xf32> -> vector<2x96xf32>
    %158 = vector.broadcast %9 : vector<1x96xf32> to vector<2x96xf32>
    %159 = arith.addf %157, %158 : vector<2x96xf32>
    %160 = vector.broadcast %156 : vector<2x1xf32> to vector<2x96xf32>
    %161 = vector.broadcast %4 : vector<1x96xf32> to vector<2x96xf32>
    %162 = arith.mulf %160, %161 : vector<2x96xf32>
    %163 = vector.broadcast %7 : vector<1x96xf32> to vector<2x96xf32>
    %164 = arith.addf %162, %163 : vector<2x96xf32>
    %165 = vector.extract_strided_slice %164 {offsets = [0, 0], sizes = [2, 64], strides = [1, 1]} : vector<2x96xf32> to vector<2x64xf32>
    %166 = vector.extract_strided_slice %159 {offsets = [0, 0], sizes = [2, 64], strides = [1, 1]} : vector<2x96xf32> to vector<2x64xf32>
    %167 = arith.addf %165, %166 : vector<2x64xf32>
    %168 = arith.negf %167 : vector<2x64xf32>
    %169 = math.exp %168 : vector<2x64xf32>
    %cst_31 = arith.constant 1.000000e+00 : f32
    %170 = vector.broadcast %cst_31 : f32 to vector<2x64xf32>
    %171 = arith.addf %170, %169 : vector<2x64xf32>
    %172 = arith.divf %170, %171 : vector<2x64xf32>
    %173 = vector.extract_strided_slice %172 {offsets = [0, 0], sizes = [2, 32], strides = [1, 1]} : vector<2x64xf32> to vector<2x32xf32>
    %174 = vector.extract_strided_slice %172 {offsets = [0, 32], sizes = [2, 32], strides = [1, 1]} : vector<2x64xf32> to vector<2x32xf32>
    %175 = vector.extract_strided_slice %164 {offsets = [0, 64], sizes = [2, 32], strides = [1, 1]} : vector<2x96xf32> to vector<2x32xf32>
    %176 = vector.extract_strided_slice %159 {offsets = [0, 64], sizes = [2, 32], strides = [1, 1]} : vector<2x96xf32> to vector<2x32xf32>
    %177 = arith.mulf %173, %176 : vector<2x32xf32>
    %178 = arith.addf %175, %177 : vector<2x32xf32>
    %179 = math.tanh %178 : vector<2x32xf32>
    %cst_32 = arith.constant 1.000000e+00 : f32
    %180 = vector.broadcast %cst_32 : f32 to vector<2x32xf32>
    %181 = arith.subf %180, %174 : vector<2x32xf32>
    %182 = arith.mulf %181, %179 : vector<2x32xf32>
    %183 = arith.mulf %174, %155 : vector<2x32xf32>
    %184 = arith.addf %182, %183 : vector<2x32xf32>
    %185 = vector.extract_strided_slice %10 {offsets = [0, 6], sizes = [2, 1], strides = [1, 1]} : vector<2x8xf32> to vector<2x1xf32>
    %cst_33 = arith.constant dense<0.000000e+00> : vector<2x96xf32>
    %186 = tpu.matmul %184, %8, %cst_33 {dimension_numbers = #tpu.dot_dimension_numbers<[1], [0], [0], [1], [0, 0, 1, 1], [], []>} : vector<2x32xf32>, vector<32x96xf32>, vector<2x96xf32> -> vector<2x96xf32>
    %187 = vector.broadcast %9 : vector<1x96xf32> to vector<2x96xf32>
    %188 = arith.addf %186, %187 : vector<2x96xf32>
    %189 = vector.broadcast %185 : vector<2x1xf32> to vector<2x96xf32>
    %190 = vector.broadcast %4 : vector<1x96xf32> to vector<2x96xf32>
    %191 = arith.mulf %189, %190 : vector<2x96xf32>
    %192 = vector.broadcast %7 : vector<1x96xf32> to vector<2x96xf32>
    %193 = arith.addf %191, %192 : vector<2x96xf32>
    %194 = vector.extract_strided_slice %193 {offsets = [0, 0], sizes = [2, 64], strides = [1, 1]} : vector<2x96xf32> to vector<2x64xf32>
    %195 = vector.extract_strided_slice %188 {offsets = [0, 0], sizes = [2, 64], strides = [1, 1]} : vector<2x96xf32> to vector<2x64xf32>
    %196 = arith.addf %194, %195 : vector<2x64xf32>
    %197 = arith.negf %196 : vector<2x64xf32>
    %198 = math.exp %197 : vector<2x64xf32>
    %cst_34 = arith.constant 1.000000e+00 : f32
    %199 = vector.broadcast %cst_34 : f32 to vector<2x64xf32>
    %200 = arith.addf %199, %198 : vector<2x64xf32>
    %201 = arith.divf %199, %200 : vector<2x64xf32>
    %202 = vector.extract_strided_slice %201 {offsets = [0, 0], sizes = [2, 32], strides = [1, 1]} : vector<2x64xf32> to vector<2x32xf32>
    %203 = vector.extract_strided_slice %201 {offsets = [0, 32], sizes = [2, 32], strides = [1, 1]} : vector<2x64xf32> to vector<2x32xf32>
    %204 = vector.extract_strided_slice %193 {offsets = [0, 64], sizes = [2, 32], strides = [1, 1]} : vector<2x96xf32> to vector<2x32xf32>
    %205 = vector.extract_strided_slice %188 {offsets = [0, 64], sizes = [2, 32], strides = [1, 1]} : vector<2x96xf32> to vector<2x32xf32>
    %206 = arith.mulf %202, %205 : vector<2x32xf32>
    %207 = arith.addf %204, %206 : vector<2x32xf32>
    %208 = math.tanh %207 : vector<2x32xf32>
    %cst_35 = arith.constant 1.000000e+00 : f32
    %209 = vector.broadcast %cst_35 : f32 to vector<2x32xf32>
    %210 = arith.subf %209, %203 : vector<2x32xf32>
    %211 = arith.mulf %210, %208 : vector<2x32xf32>
    %212 = arith.mulf %203, %184 : vector<2x32xf32>
    %213 = arith.addf %211, %212 : vector<2x32xf32>
    %214 = vector.extract_strided_slice %10 {offsets = [0, 7], sizes = [2, 1], strides = [1, 1]} : vector<2x8xf32> to vector<2x1xf32>
    %cst_36 = arith.constant dense<0.000000e+00> : vector<2x96xf32>
    %215 = tpu.matmul %213, %8, %cst_36 {dimension_numbers = #tpu.dot_dimension_numbers<[1], [0], [0], [1], [0, 0, 1, 1], [], []>} : vector<2x32xf32>, vector<32x96xf32>, vector<2x96xf32> -> vector<2x96xf32>
    %216 = vector.broadcast %9 : vector<1x96xf32> to vector<2x96xf32>
    %217 = arith.addf %215, %216 : vector<2x96xf32>
    %218 = vector.broadcast %214 : vector<2x1xf32> to vector<2x96xf32>
    %219 = vector.broadcast %4 : vector<1x96xf32> to vector<2x96xf32>
    %220 = arith.mulf %218, %219 : vector<2x96xf32>
    %221 = vector.broadcast %7 : vector<1x96xf32> to vector<2x96xf32>
    %222 = arith.addf %220, %221 : vector<2x96xf32>
    %223 = vector.extract_strided_slice %222 {offsets = [0, 0], sizes = [2, 64], strides = [1, 1]} : vector<2x96xf32> to vector<2x64xf32>
    %224 = vector.extract_strided_slice %217 {offsets = [0, 0], sizes = [2, 64], strides = [1, 1]} : vector<2x96xf32> to vector<2x64xf32>
    %225 = arith.addf %223, %224 : vector<2x64xf32>
    %226 = arith.negf %225 : vector<2x64xf32>
    %227 = math.exp %226 : vector<2x64xf32>
    %cst_37 = arith.constant 1.000000e+00 : f32
    %228 = vector.broadcast %cst_37 : f32 to vector<2x64xf32>
    %229 = arith.addf %228, %227 : vector<2x64xf32>
    %230 = arith.divf %228, %229 : vector<2x64xf32>
    %231 = vector.extract_strided_slice %230 {offsets = [0, 0], sizes = [2, 32], strides = [1, 1]} : vector<2x64xf32> to vector<2x32xf32>
    %232 = vector.extract_strided_slice %230 {offsets = [0, 32], sizes = [2, 32], strides = [1, 1]} : vector<2x64xf32> to vector<2x32xf32>
    %233 = vector.extract_strided_slice %222 {offsets = [0, 64], sizes = [2, 32], strides = [1, 1]} : vector<2x96xf32> to vector<2x32xf32>
    %234 = vector.extract_strided_slice %217 {offsets = [0, 64], sizes = [2, 32], strides = [1, 1]} : vector<2x96xf32> to vector<2x32xf32>
    %235 = arith.mulf %231, %234 : vector<2x32xf32>
    %236 = arith.addf %233, %235 : vector<2x32xf32>
    %237 = math.tanh %236 : vector<2x32xf32>
    %cst_38 = arith.constant 1.000000e+00 : f32
    %238 = vector.broadcast %cst_38 : f32 to vector<2x32xf32>
    %239 = arith.subf %238, %232 : vector<2x32xf32>
    %240 = arith.mulf %239, %237 : vector<2x32xf32>
    %241 = arith.mulf %232, %213 : vector<2x32xf32>
    %242 = arith.addf %240, %241 : vector<2x32xf32>
    %c0_39 = arith.constant 0 : index
    %c0_40 = arith.constant 0 : index
    %243 = vector.load %arg9[%c0_39, %c0_40] : memref<1x8xf32, #tpu.memory_space<vmem>>, vector<1x8xf32>
    %c0_41 = arith.constant 0 : index
    %c0_42 = arith.constant 0 : index
    %244 = vector.load %arg10[%c0_41, %c0_42] : memref<1x8xf32, #tpu.memory_space<vmem>>, vector<1x8xf32>
    %c0_43 = arith.constant 0 : index
    %c0_44 = arith.constant 0 : index
    %245 = vector.load %arg11[%c0_43, %c0_44] : memref<8x96xf32, #tpu.memory_space<vmem>>, vector<8x96xf32>
    %cst_45 = arith.constant dense<0.000000e+00> : vector<1x96xf32>
    %246 = tpu.matmul %243, %245, %cst_45 {dimension_numbers = #tpu.dot_dimension_numbers<[1], [0], [0], [1], [0, 0, 1, 1], [], []>} : vector<1x8xf32>, vector<8x96xf32>, vector<1x96xf32> -> vector<1x96xf32>
    %cst_46 = arith.constant dense<0.000000e+00> : vector<1x96xf32>
    %247 = tpu.matmul %244, %245, %cst_46 {dimension_numbers = #tpu.dot_dimension_numbers<[1], [0], [0], [1], [0, 0, 1, 1], [], []>} : vector<1x8xf32>, vector<8x96xf32>, vector<1x96xf32> -> vector<1x96xf32>
    %c0_47 = arith.constant 0 : index
    %c0_48 = arith.constant 0 : index
    %248 = vector.load %arg13[%c0_47, %c0_48] : memref<1x96xf32, #tpu.memory_space<vmem>>, vector<1x96xf32>
    %249 = arith.addf %247, %248 : vector<1x96xf32>
    %c0_49 = arith.constant 0 : index
    %c0_50 = arith.constant 0 : index
    %250 = vector.load %arg12[%c0_49, %c0_50] : memref<32x96xf32, #tpu.memory_space<vmem>>, vector<32x96xf32>
    %c0_51 = arith.constant 0 : index
    %c0_52 = arith.constant 0 : index
    %251 = vector.load %arg14[%c0_51, %c0_52] : memref<1x96xf32, #tpu.memory_space<vmem>>, vector<1x96xf32>
    %c0_53 = arith.constant 0 : index
    %c0_54 = arith.constant 0 : index
    %252 = vector.load %arg1[%c0_53, %c0_54] : memref<2x8xf32, #tpu.memory_space<vmem>>, vector<2x8xf32>
    %253 = vector.extract_strided_slice %252 {offsets = [0, 0], sizes = [2, 1], strides = [1, 1]} : vector<2x8xf32> to vector<2x1xf32>
    %cst_55 = arith.constant dense<0.000000e+00> : vector<2x96xf32>
    %254 = tpu.matmul %242, %250, %cst_55 {dimension_numbers = #tpu.dot_dimension_numbers<[1], [0], [0], [1], [0, 0, 1, 1], [], []>} : vector<2x32xf32>, vector<32x96xf32>, vector<2x96xf32> -> vector<2x96xf32>
    %255 = vector.broadcast %251 : vector<1x96xf32> to vector<2x96xf32>
    %256 = arith.addf %254, %255 : vector<2x96xf32>
    %257 = vector.broadcast %253 : vector<2x1xf32> to vector<2x96xf32>
    %258 = vector.broadcast %246 : vector<1x96xf32> to vector<2x96xf32>
    %259 = arith.mulf %257, %258 : vector<2x96xf32>
    %260 = vector.broadcast %249 : vector<1x96xf32> to vector<2x96xf32>
    %261 = arith.addf %259, %260 : vector<2x96xf32>
    %262 = vector.extract_strided_slice %261 {offsets = [0, 0], sizes = [2, 64], strides = [1, 1]} : vector<2x96xf32> to vector<2x64xf32>
    %263 = vector.extract_strided_slice %256 {offsets = [0, 0], sizes = [2, 64], strides = [1, 1]} : vector<2x96xf32> to vector<2x64xf32>
    %264 = arith.addf %262, %263 : vector<2x64xf32>
    %265 = arith.negf %264 : vector<2x64xf32>
    %266 = math.exp %265 : vector<2x64xf32>
    %cst_56 = arith.constant 1.000000e+00 : f32
    %267 = vector.broadcast %cst_56 : f32 to vector<2x64xf32>
    %268 = arith.addf %267, %266 : vector<2x64xf32>
    %269 = arith.divf %267, %268 : vector<2x64xf32>
    %270 = vector.extract_strided_slice %269 {offsets = [0, 0], sizes = [2, 32], strides = [1, 1]} : vector<2x64xf32> to vector<2x32xf32>
    %271 = vector.extract_strided_slice %269 {offsets = [0, 32], sizes = [2, 32], strides = [1, 1]} : vector<2x64xf32> to vector<2x32xf32>
    %272 = vector.extract_strided_slice %261 {offsets = [0, 64], sizes = [2, 32], strides = [1, 1]} : vector<2x96xf32> to vector<2x32xf32>
    %273 = vector.extract_strided_slice %256 {offsets = [0, 64], sizes = [2, 32], strides = [1, 1]} : vector<2x96xf32> to vector<2x32xf32>
    %274 = arith.mulf %270, %273 : vector<2x32xf32>
    %275 = arith.addf %272, %274 : vector<2x32xf32>
    %276 = math.tanh %275 : vector<2x32xf32>
    %cst_57 = arith.constant 1.000000e+00 : f32
    %277 = vector.broadcast %cst_57 : f32 to vector<2x32xf32>
    %278 = arith.subf %277, %271 : vector<2x32xf32>
    %279 = arith.mulf %278, %276 : vector<2x32xf32>
    %280 = arith.mulf %271, %242 : vector<2x32xf32>
    %281 = arith.addf %279, %280 : vector<2x32xf32>
    %282 = vector.extract_strided_slice %281 {offsets = [0, 0], sizes = [1, 32], strides = [1, 1]} : vector<2x32xf32> to vector<1x32xf32>
    %c0_58 = arith.constant 0 : index
    %c0_59 = arith.constant 0 : index
    %283 = vector.load %arg18[%c0_58, %c0_59] : memref<16x32xf32, #tpu.memory_space<vmem>>, vector<1x32xf32>
    tpu.vector_store %arg18[%c0_58, %c0_59], %282 {strides = array<i32>} : memref<16x32xf32, #tpu.memory_space<vmem>>, vector<1x32xf32>,
    %284 = vector.extract_strided_slice %281 {offsets = [1, 0], sizes = [1, 32], strides = [1, 1]} : vector<2x32xf32> to vector<1x32xf32>
    %c8 = arith.constant 8 : index
    %c0_60 = arith.constant 0 : index
    %285 = vector.load %arg18[%c8, %c0_60] : memref<16x32xf32, #tpu.memory_space<vmem>>, vector<1x32xf32>
    tpu.vector_store %arg18[%c8, %c0_60], %284 {strides = array<i32>} : memref<16x32xf32, #tpu.memory_space<vmem>>, vector<1x32xf32>,
    %286 = vector.extract_strided_slice %252 {offsets = [0, 1], sizes = [2, 1], strides = [1, 1]} : vector<2x8xf32> to vector<2x1xf32>
    %cst_61 = arith.constant dense<0.000000e+00> : vector<2x96xf32>
    %287 = tpu.matmul %281, %250, %cst_61 {dimension_numbers = #tpu.dot_dimension_numbers<[1], [0], [0], [1], [0, 0, 1, 1], [], []>} : vector<2x32xf32>, vector<32x96xf32>, vector<2x96xf32> -> vector<2x96xf32>
    %288 = vector.broadcast %251 : vector<1x96xf32> to vector<2x96xf32>
    %289 = arith.addf %287, %288 : vector<2x96xf32>
    %290 = vector.broadcast %286 : vector<2x1xf32> to vector<2x96xf32>
    %291 = vector.broadcast %246 : vector<1x96xf32> to vector<2x96xf32>
    %292 = arith.mulf %290, %291 : vector<2x96xf32>
    %293 = vector.broadcast %249 : vector<1x96xf32> to vector<2x96xf32>
    %294 = arith.addf %292, %293 : vector<2x96xf32>
    %295 = vector.extract_strided_slice %294 {offsets = [0, 0], sizes = [2, 64], strides = [1, 1]} : vector<2x96xf32> to vector<2x64xf32>
    %296 = vector.extract_strided_slice %289 {offsets = [0, 0], sizes = [2, 64], strides = [1, 1]} : vector<2x96xf32> to vector<2x64xf32>
    %297 = arith.addf %295, %296 : vector<2x64xf32>
    %298 = arith.negf %297 : vector<2x64xf32>
    %299 = math.exp %298 : vector<2x64xf32>
    %cst_62 = arith.constant 1.000000e+00 : f32
    %300 = vector.broadcast %cst_62 : f32 to vector<2x64xf32>
    %301 = arith.addf %300, %299 : vector<2x64xf32>
    %302 = arith.divf %300, %301 : vector<2x64xf32>
    %303 = vector.extract_strided_slice %302 {offsets = [0, 0], sizes = [2, 32], strides = [1, 1]} : vector<2x64xf32> to vector<2x32xf32>
    %304 = vector.extract_strided_slice %302 {offsets = [0, 32], sizes = [2, 32], strides = [1, 1]} : vector<2x64xf32> to vector<2x32xf32>
    %305 = vector.extract_strided_slice %294 {offsets = [0, 64], sizes = [2, 32], strides = [1, 1]} : vector<2x96xf32> to vector<2x32xf32>
    %306 = vector.extract_strided_slice %289 {offsets = [0, 64], sizes = [2, 32], strides = [1, 1]} : vector<2x96xf32> to vector<2x32xf32>
    %307 = arith.mulf %303, %306 : vector<2x32xf32>
    %308 = arith.addf %305, %307 : vector<2x32xf32>
    %309 = math.tanh %308 : vector<2x32xf32>
    %cst_63 = arith.constant 1.000000e+00 : f32
    %310 = vector.broadcast %cst_63 : f32 to vector<2x32xf32>
    %311 = arith.subf %310, %304 : vector<2x32xf32>
    %312 = arith.mulf %311, %309 : vector<2x32xf32>
    %313 = arith.mulf %304, %281 : vector<2x32xf32>
    %314 = arith.addf %312, %313 : vector<2x32xf32>
    %315 = vector.extract_strided_slice %314 {offsets = [0, 0], sizes = [1, 32], strides = [1, 1]} : vector<2x32xf32> to vector<1x32xf32>
    %c1 = arith.constant 1 : index
    %c0_64 = arith.constant 0 : index
    %316 = vector.load %arg18[%c1, %c0_64] : memref<16x32xf32, #tpu.memory_space<vmem>>, vector<1x32xf32>
    tpu.vector_store %arg18[%c1, %c0_64], %315 {strides = array<i32>} : memref<16x32xf32, #tpu.memory_space<vmem>>, vector<1x32xf32>,
    %317 = vector.extract_strided_slice %314 {offsets = [1, 0], sizes = [1, 32], strides = [1, 1]} : vector<2x32xf32> to vector<1x32xf32>
    %c9 = arith.constant 9 : index
    %c0_65 = arith.constant 0 : index
    %318 = vector.load %arg18[%c9, %c0_65] : memref<16x32xf32, #tpu.memory_space<vmem>>, vector<1x32xf32>
    tpu.vector_store %arg18[%c9, %c0_65], %317 {strides = array<i32>} : memref<16x32xf32, #tpu.memory_space<vmem>>, vector<1x32xf32>,
    %319 = vector.extract_strided_slice %252 {offsets = [0, 2], sizes = [2, 1], strides = [1, 1]} : vector<2x8xf32> to vector<2x1xf32>
    %cst_66 = arith.constant dense<0.000000e+00> : vector<2x96xf32>
    %320 = tpu.matmul %314, %250, %cst_66 {dimension_numbers = #tpu.dot_dimension_numbers<[1], [0], [0], [1], [0, 0, 1, 1], [], []>} : vector<2x32xf32>, vector<32x96xf32>, vector<2x96xf32> -> vector<2x96xf32>
    %321 = vector.broadcast %251 : vector<1x96xf32> to vector<2x96xf32>
    %322 = arith.addf %320, %321 : vector<2x96xf32>
    %323 = vector.broadcast %319 : vector<2x1xf32> to vector<2x96xf32>
    %324 = vector.broadcast %246 : vector<1x96xf32> to vector<2x96xf32>
    %325 = arith.mulf %323, %324 : vector<2x96xf32>
    %326 = vector.broadcast %249 : vector<1x96xf32> to vector<2x96xf32>
    %327 = arith.addf %325, %326 : vector<2x96xf32>
    %328 = vector.extract_strided_slice %327 {offsets = [0, 0], sizes = [2, 64], strides = [1, 1]} : vector<2x96xf32> to vector<2x64xf32>
    %329 = vector.extract_strided_slice %322 {offsets = [0, 0], sizes = [2, 64], strides = [1, 1]} : vector<2x96xf32> to vector<2x64xf32>
    %330 = arith.addf %328, %329 : vector<2x64xf32>
    %331 = arith.negf %330 : vector<2x64xf32>
    %332 = math.exp %331 : vector<2x64xf32>
    %cst_67 = arith.constant 1.000000e+00 : f32
    %333 = vector.broadcast %cst_67 : f32 to vector<2x64xf32>
    %334 = arith.addf %333, %332 : vector<2x64xf32>
    %335 = arith.divf %333, %334 : vector<2x64xf32>
    %336 = vector.extract_strided_slice %335 {offsets = [0, 0], sizes = [2, 32], strides = [1, 1]} : vector<2x64xf32> to vector<2x32xf32>
    %337 = vector.extract_strided_slice %335 {offsets = [0, 32], sizes = [2, 32], strides = [1, 1]} : vector<2x64xf32> to vector<2x32xf32>
    %338 = vector.extract_strided_slice %327 {offsets = [0, 64], sizes = [2, 32], strides = [1, 1]} : vector<2x96xf32> to vector<2x32xf32>
    %339 = vector.extract_strided_slice %322 {offsets = [0, 64], sizes = [2, 32], strides = [1, 1]} : vector<2x96xf32> to vector<2x32xf32>
    %340 = arith.mulf %336, %339 : vector<2x32xf32>
    %341 = arith.addf %338, %340 : vector<2x32xf32>
    %342 = math.tanh %341 : vector<2x32xf32>
    %cst_68 = arith.constant 1.000000e+00 : f32
    %343 = vector.broadcast %cst_68 : f32 to vector<2x32xf32>
    %344 = arith.subf %343, %337 : vector<2x32xf32>
    %345 = arith.mulf %344, %342 : vector<2x32xf32>
    %346 = arith.mulf %337, %314 : vector<2x32xf32>
    %347 = arith.addf %345, %346 : vector<2x32xf32>
    %348 = vector.extract_strided_slice %347 {offsets = [0, 0], sizes = [1, 32], strides = [1, 1]} : vector<2x32xf32> to vector<1x32xf32>
    %c2 = arith.constant 2 : index
    %c0_69 = arith.constant 0 : index
    %349 = vector.load %arg18[%c2, %c0_69] : memref<16x32xf32, #tpu.memory_space<vmem>>, vector<1x32xf32>
    tpu.vector_store %arg18[%c2, %c0_69], %348 {strides = array<i32>} : memref<16x32xf32, #tpu.memory_space<vmem>>, vector<1x32xf32>,
    %350 = vector.extract_strided_slice %347 {offsets = [1, 0], sizes = [1, 32], strides = [1, 1]} : vector<2x32xf32> to vector<1x32xf32>
    %c10 = arith.constant 10 : index
    %c0_70 = arith.constant 0 : index
    %351 = vector.load %arg18[%c10, %c0_70] : memref<16x32xf32, #tpu.memory_space<vmem>>, vector<1x32xf32>
    tpu.vector_store %arg18[%c10, %c0_70], %350 {strides = array<i32>} : memref<16x32xf32, #tpu.memory_space<vmem>>, vector<1x32xf32>,
    %352 = vector.extract_strided_slice %252 {offsets = [0, 3], sizes = [2, 1], strides = [1, 1]} : vector<2x8xf32> to vector<2x1xf32>
    %cst_71 = arith.constant dense<0.000000e+00> : vector<2x96xf32>
    %353 = tpu.matmul %347, %250, %cst_71 {dimension_numbers = #tpu.dot_dimension_numbers<[1], [0], [0], [1], [0, 0, 1, 1], [], []>} : vector<2x32xf32>, vector<32x96xf32>, vector<2x96xf32> -> vector<2x96xf32>
    %354 = vector.broadcast %251 : vector<1x96xf32> to vector<2x96xf32>
    %355 = arith.addf %353, %354 : vector<2x96xf32>
    %356 = vector.broadcast %352 : vector<2x1xf32> to vector<2x96xf32>
    %357 = vector.broadcast %246 : vector<1x96xf32> to vector<2x96xf32>
    %358 = arith.mulf %356, %357 : vector<2x96xf32>
    %359 = vector.broadcast %249 : vector<1x96xf32> to vector<2x96xf32>
    %360 = arith.addf %358, %359 : vector<2x96xf32>
    %361 = vector.extract_strided_slice %360 {offsets = [0, 0], sizes = [2, 64], strides = [1, 1]} : vector<2x96xf32> to vector<2x64xf32>
    %362 = vector.extract_strided_slice %355 {offsets = [0, 0], sizes = [2, 64], strides = [1, 1]} : vector<2x96xf32> to vector<2x64xf32>
    %363 = arith.addf %361, %362 : vector<2x64xf32>
    %364 = arith.negf %363 : vector<2x64xf32>
    %365 = math.exp %364 : vector<2x64xf32>
    %cst_72 = arith.constant 1.000000e+00 : f32
    %366 = vector.broadcast %cst_72 : f32 to vector<2x64xf32>
    %367 = arith.addf %366, %365 : vector<2x64xf32>
    %368 = arith.divf %366, %367 : vector<2x64xf32>
    %369 = vector.extract_strided_slice %368 {offsets = [0, 0], sizes = [2, 32], strides = [1, 1]} : vector<2x64xf32> to vector<2x32xf32>
    %370 = vector.extract_strided_slice %368 {offsets = [0, 32], sizes = [2, 32], strides = [1, 1]} : vector<2x64xf32> to vector<2x32xf32>
    %371 = vector.extract_strided_slice %360 {offsets = [0, 64], sizes = [2, 32], strides = [1, 1]} : vector<2x96xf32> to vector<2x32xf32>
    %372 = vector.extract_strided_slice %355 {offsets = [0, 64], sizes = [2, 32], strides = [1, 1]} : vector<2x96xf32> to vector<2x32xf32>
    %373 = arith.mulf %369, %372 : vector<2x32xf32>
    %374 = arith.addf %371, %373 : vector<2x32xf32>
    %375 = math.tanh %374 : vector<2x32xf32>
    %cst_73 = arith.constant 1.000000e+00 : f32
    %376 = vector.broadcast %cst_73 : f32 to vector<2x32xf32>
    %377 = arith.subf %376, %370 : vector<2x32xf32>
    %378 = arith.mulf %377, %375 : vector<2x32xf32>
    %379 = arith.mulf %370, %347 : vector<2x32xf32>
    %380 = arith.addf %378, %379 : vector<2x32xf32>
    %381 = vector.extract_strided_slice %380 {offsets = [0, 0], sizes = [1, 32], strides = [1, 1]} : vector<2x32xf32> to vector<1x32xf32>
    %c3 = arith.constant 3 : index
    %c0_74 = arith.constant 0 : index
    %382 = vector.load %arg18[%c3, %c0_74] : memref<16x32xf32, #tpu.memory_space<vmem>>, vector<1x32xf32>
    tpu.vector_store %arg18[%c3, %c0_74], %381 {strides = array<i32>} : memref<16x32xf32, #tpu.memory_space<vmem>>, vector<1x32xf32>,
    %383 = vector.extract_strided_slice %380 {offsets = [1, 0], sizes = [1, 32], strides = [1, 1]} : vector<2x32xf32> to vector<1x32xf32>
    %c11 = arith.constant 11 : index
    %c0_75 = arith.constant 0 : index
    %384 = vector.load %arg18[%c11, %c0_75] : memref<16x32xf32, #tpu.memory_space<vmem>>, vector<1x32xf32>
    tpu.vector_store %arg18[%c11, %c0_75], %383 {strides = array<i32>} : memref<16x32xf32, #tpu.memory_space<vmem>>, vector<1x32xf32>,
    %385 = vector.extract_strided_slice %252 {offsets = [0, 4], sizes = [2, 1], strides = [1, 1]} : vector<2x8xf32> to vector<2x1xf32>
    %cst_76 = arith.constant dense<0.000000e+00> : vector<2x96xf32>
    %386 = tpu.matmul %380, %250, %cst_76 {dimension_numbers = #tpu.dot_dimension_numbers<[1], [0], [0], [1], [0, 0, 1, 1], [], []>} : vector<2x32xf32>, vector<32x96xf32>, vector<2x96xf32> -> vector<2x96xf32>
    %387 = vector.broadcast %251 : vector<1x96xf32> to vector<2x96xf32>
    %388 = arith.addf %386, %387 : vector<2x96xf32>
    %389 = vector.broadcast %385 : vector<2x1xf32> to vector<2x96xf32>
    %390 = vector.broadcast %246 : vector<1x96xf32> to vector<2x96xf32>
    %391 = arith.mulf %389, %390 : vector<2x96xf32>
    %392 = vector.broadcast %249 : vector<1x96xf32> to vector<2x96xf32>
    %393 = arith.addf %391, %392 : vector<2x96xf32>
    %394 = vector.extract_strided_slice %393 {offsets = [0, 0], sizes = [2, 64], strides = [1, 1]} : vector<2x96xf32> to vector<2x64xf32>
    %395 = vector.extract_strided_slice %388 {offsets = [0, 0], sizes = [2, 64], strides = [1, 1]} : vector<2x96xf32> to vector<2x64xf32>
    %396 = arith.addf %394, %395 : vector<2x64xf32>
    %397 = arith.negf %396 : vector<2x64xf32>
    %398 = math.exp %397 : vector<2x64xf32>
    %cst_77 = arith.constant 1.000000e+00 : f32
    %399 = vector.broadcast %cst_77 : f32 to vector<2x64xf32>
    %400 = arith.addf %399, %398 : vector<2x64xf32>
    %401 = arith.divf %399, %400 : vector<2x64xf32>
    %402 = vector.extract_strided_slice %401 {offsets = [0, 0], sizes = [2, 32], strides = [1, 1]} : vector<2x64xf32> to vector<2x32xf32>
    %403 = vector.extract_strided_slice %401 {offsets = [0, 32], sizes = [2, 32], strides = [1, 1]} : vector<2x64xf32> to vector<2x32xf32>
    %404 = vector.extract_strided_slice %393 {offsets = [0, 64], sizes = [2, 32], strides = [1, 1]} : vector<2x96xf32> to vector<2x32xf32>
    %405 = vector.extract_strided_slice %388 {offsets = [0, 64], sizes = [2, 32], strides = [1, 1]} : vector<2x96xf32> to vector<2x32xf32>
    %406 = arith.mulf %402, %405 : vector<2x32xf32>
    %407 = arith.addf %404, %406 : vector<2x32xf32>
    %408 = math.tanh %407 : vector<2x32xf32>
    %cst_78 = arith.constant 1.000000e+00 : f32
    %409 = vector.broadcast %cst_78 : f32 to vector<2x32xf32>
    %410 = arith.subf %409, %403 : vector<2x32xf32>
    %411 = arith.mulf %410, %408 : vector<2x32xf32>
    %412 = arith.mulf %403, %380 : vector<2x32xf32>
    %413 = arith.addf %411, %412 : vector<2x32xf32>
    %414 = vector.extract_strided_slice %413 {offsets = [0, 0], sizes = [1, 32], strides = [1, 1]} : vector<2x32xf32> to vector<1x32xf32>
    %c4 = arith.constant 4 : index
    %c0_79 = arith.constant 0 : index
    %415 = vector.load %arg18[%c4, %c0_79] : memref<16x32xf32, #tpu.memory_space<vmem>>, vector<1x32xf32>
    tpu.vector_store %arg18[%c4, %c0_79], %414 {strides = array<i32>} : memref<16x32xf32, #tpu.memory_space<vmem>>, vector<1x32xf32>,
    %416 = vector.extract_strided_slice %413 {offsets = [1, 0], sizes = [1, 32], strides = [1, 1]} : vector<2x32xf32> to vector<1x32xf32>
    %c12 = arith.constant 12 : index
    %c0_80 = arith.constant 0 : index
    %417 = vector.load %arg18[%c12, %c0_80] : memref<16x32xf32, #tpu.memory_space<vmem>>, vector<1x32xf32>
    tpu.vector_store %arg18[%c12, %c0_80], %416 {strides = array<i32>} : memref<16x32xf32, #tpu.memory_space<vmem>>, vector<1x32xf32>,
    %418 = vector.extract_strided_slice %252 {offsets = [0, 5], sizes = [2, 1], strides = [1, 1]} : vector<2x8xf32> to vector<2x1xf32>
    %cst_81 = arith.constant dense<0.000000e+00> : vector<2x96xf32>
    %419 = tpu.matmul %413, %250, %cst_81 {dimension_numbers = #tpu.dot_dimension_numbers<[1], [0], [0], [1], [0, 0, 1, 1], [], []>} : vector<2x32xf32>, vector<32x96xf32>, vector<2x96xf32> -> vector<2x96xf32>
    %420 = vector.broadcast %251 : vector<1x96xf32> to vector<2x96xf32>
    %421 = arith.addf %419, %420 : vector<2x96xf32>
    %422 = vector.broadcast %418 : vector<2x1xf32> to vector<2x96xf32>
    %423 = vector.broadcast %246 : vector<1x96xf32> to vector<2x96xf32>
    %424 = arith.mulf %422, %423 : vector<2x96xf32>
    %425 = vector.broadcast %249 : vector<1x96xf32> to vector<2x96xf32>
    %426 = arith.addf %424, %425 : vector<2x96xf32>
    %427 = vector.extract_strided_slice %426 {offsets = [0, 0], sizes = [2, 64], strides = [1, 1]} : vector<2x96xf32> to vector<2x64xf32>
    %428 = vector.extract_strided_slice %421 {offsets = [0, 0], sizes = [2, 64], strides = [1, 1]} : vector<2x96xf32> to vector<2x64xf32>
    %429 = arith.addf %427, %428 : vector<2x64xf32>
    %430 = arith.negf %429 : vector<2x64xf32>
    %431 = math.exp %430 : vector<2x64xf32>
    %cst_82 = arith.constant 1.000000e+00 : f32
    %432 = vector.broadcast %cst_82 : f32 to vector<2x64xf32>
    %433 = arith.addf %432, %431 : vector<2x64xf32>
    %434 = arith.divf %432, %433 : vector<2x64xf32>
    %435 = vector.extract_strided_slice %434 {offsets = [0, 0], sizes = [2, 32], strides = [1, 1]} : vector<2x64xf32> to vector<2x32xf32>
    %436 = vector.extract_strided_slice %434 {offsets = [0, 32], sizes = [2, 32], strides = [1, 1]} : vector<2x64xf32> to vector<2x32xf32>
    %437 = vector.extract_strided_slice %426 {offsets = [0, 64], sizes = [2, 32], strides = [1, 1]} : vector<2x96xf32> to vector<2x32xf32>
    %438 = vector.extract_strided_slice %421 {offsets = [0, 64], sizes = [2, 32], strides = [1, 1]} : vector<2x96xf32> to vector<2x32xf32>
    %439 = arith.mulf %435, %438 : vector<2x32xf32>
    %440 = arith.addf %437, %439 : vector<2x32xf32>
    %441 = math.tanh %440 : vector<2x32xf32>
    %cst_83 = arith.constant 1.000000e+00 : f32
    %442 = vector.broadcast %cst_83 : f32 to vector<2x32xf32>
    %443 = arith.subf %442, %436 : vector<2x32xf32>
    %444 = arith.mulf %443, %441 : vector<2x32xf32>
    %445 = arith.mulf %436, %413 : vector<2x32xf32>
    %446 = arith.addf %444, %445 : vector<2x32xf32>
    %447 = vector.extract_strided_slice %446 {offsets = [0, 0], sizes = [1, 32], strides = [1, 1]} : vector<2x32xf32> to vector<1x32xf32>
    %c5 = arith.constant 5 : index
    %c0_84 = arith.constant 0 : index
    %448 = vector.load %arg18[%c5, %c0_84] : memref<16x32xf32, #tpu.memory_space<vmem>>, vector<1x32xf32>
    tpu.vector_store %arg18[%c5, %c0_84], %447 {strides = array<i32>} : memref<16x32xf32, #tpu.memory_space<vmem>>, vector<1x32xf32>,
    %449 = vector.extract_strided_slice %446 {offsets = [1, 0], sizes = [1, 32], strides = [1, 1]} : vector<2x32xf32> to vector<1x32xf32>
    %c13 = arith.constant 13 : index
    %c0_85 = arith.constant 0 : index
    %450 = vector.load %arg18[%c13, %c0_85] : memref<16x32xf32, #tpu.memory_space<vmem>>, vector<1x32xf32>
    tpu.vector_store %arg18[%c13, %c0_85], %449 {strides = array<i32>} : memref<16x32xf32, #tpu.memory_space<vmem>>, vector<1x32xf32>,
    %451 = vector.extract_strided_slice %252 {offsets = [0, 6], sizes = [2, 1], strides = [1, 1]} : vector<2x8xf32> to vector<2x1xf32>
    %cst_86 = arith.constant dense<0.000000e+00> : vector<2x96xf32>
    %452 = tpu.matmul %446, %250, %cst_86 {dimension_numbers = #tpu.dot_dimension_numbers<[1], [0], [0], [1], [0, 0, 1, 1], [], []>} : vector<2x32xf32>, vector<32x96xf32>, vector<2x96xf32> -> vector<2x96xf32>
    %453 = vector.broadcast %251 : vector<1x96xf32> to vector<2x96xf32>
    %454 = arith.addf %452, %453 : vector<2x96xf32>
    %455 = vector.broadcast %451 : vector<2x1xf32> to vector<2x96xf32>
    %456 = vector.broadcast %246 : vector<1x96xf32> to vector<2x96xf32>
    %457 = arith.mulf %455, %456 : vector<2x96xf32>
    %458 = vector.broadcast %249 : vector<1x96xf32> to vector<2x96xf32>
    %459 = arith.addf %457, %458 : vector<2x96xf32>
    %460 = vector.extract_strided_slice %459 {offsets = [0, 0], sizes = [2, 64], strides = [1, 1]} : vector<2x96xf32> to vector<2x64xf32>
    %461 = vector.extract_strided_slice %454 {offsets = [0, 0], sizes = [2, 64], strides = [1, 1]} : vector<2x96xf32> to vector<2x64xf32>
    %462 = arith.addf %460, %461 : vector<2x64xf32>
    %463 = arith.negf %462 : vector<2x64xf32>
    %464 = math.exp %463 : vector<2x64xf32>
    %cst_87 = arith.constant 1.000000e+00 : f32
    %465 = vector.broadcast %cst_87 : f32 to vector<2x64xf32>
    %466 = arith.addf %465, %464 : vector<2x64xf32>
    %467 = arith.divf %465, %466 : vector<2x64xf32>
    %468 = vector.extract_strided_slice %467 {offsets = [0, 0], sizes = [2, 32], strides = [1, 1]} : vector<2x64xf32> to vector<2x32xf32>
    %469 = vector.extract_strided_slice %467 {offsets = [0, 32], sizes = [2, 32], strides = [1, 1]} : vector<2x64xf32> to vector<2x32xf32>
    %470 = vector.extract_strided_slice %459 {offsets = [0, 64], sizes = [2, 32], strides = [1, 1]} : vector<2x96xf32> to vector<2x32xf32>
    %471 = vector.extract_strided_slice %454 {offsets = [0, 64], sizes = [2, 32], strides = [1, 1]} : vector<2x96xf32> to vector<2x32xf32>
    %472 = arith.mulf %468, %471 : vector<2x32xf32>
    %473 = arith.addf %470, %472 : vector<2x32xf32>
    %474 = math.tanh %473 : vector<2x32xf32>
    %cst_88 = arith.constant 1.000000e+00 : f32
    %475 = vector.broadcast %cst_88 : f32 to vector<2x32xf32>
    %476 = arith.subf %475, %469 : vector<2x32xf32>
    %477 = arith.mulf %476, %474 : vector<2x32xf32>
    %478 = arith.mulf %469, %446 : vector<2x32xf32>
    %479 = arith.addf %477, %478 : vector<2x32xf32>
    %480 = vector.extract_strided_slice %479 {offsets = [0, 0], sizes = [1, 32], strides = [1, 1]} : vector<2x32xf32> to vector<1x32xf32>
    %c6 = arith.constant 6 : index
    %c0_89 = arith.constant 0 : index
    %481 = vector.load %arg18[%c6, %c0_89] : memref<16x32xf32, #tpu.memory_space<vmem>>, vector<1x32xf32>
    tpu.vector_store %arg18[%c6, %c0_89], %480 {strides = array<i32>} : memref<16x32xf32, #tpu.memory_space<vmem>>, vector<1x32xf32>,
    %482 = vector.extract_strided_slice %479 {offsets = [1, 0], sizes = [1, 32], strides = [1, 1]} : vector<2x32xf32> to vector<1x32xf32>
    %c14 = arith.constant 14 : index
    %c0_90 = arith.constant 0 : index
    %483 = vector.load %arg18[%c14, %c0_90] : memref<16x32xf32, #tpu.memory_space<vmem>>, vector<1x32xf32>
    tpu.vector_store %arg18[%c14, %c0_90], %482 {strides = array<i32>} : memref<16x32xf32, #tpu.memory_space<vmem>>, vector<1x32xf32>,
    %484 = vector.extract_strided_slice %252 {offsets = [0, 7], sizes = [2, 1], strides = [1, 1]} : vector<2x8xf32> to vector<2x1xf32>
    %cst_91 = arith.constant dense<0.000000e+00> : vector<2x96xf32>
    %485 = tpu.matmul %479, %250, %cst_91 {dimension_numbers = #tpu.dot_dimension_numbers<[1], [0], [0], [1], [0, 0, 1, 1], [], []>} : vector<2x32xf32>, vector<32x96xf32>, vector<2x96xf32> -> vector<2x96xf32>
    %486 = vector.broadcast %251 : vector<1x96xf32> to vector<2x96xf32>
    %487 = arith.addf %485, %486 : vector<2x96xf32>
    %488 = vector.broadcast %484 : vector<2x1xf32> to vector<2x96xf32>
    %489 = vector.broadcast %246 : vector<1x96xf32> to vector<2x96xf32>
    %490 = arith.mulf %488, %489 : vector<2x96xf32>
    %491 = vector.broadcast %249 : vector<1x96xf32> to vector<2x96xf32>
    %492 = arith.addf %490, %491 : vector<2x96xf32>
    %493 = vector.extract_strided_slice %492 {offsets = [0, 0], sizes = [2, 64], strides = [1, 1]} : vector<2x96xf32> to vector<2x64xf32>
    %494 = vector.extract_strided_slice %487 {offsets = [0, 0], sizes = [2, 64], strides = [1, 1]} : vector<2x96xf32> to vector<2x64xf32>
    %495 = arith.addf %493, %494 : vector<2x64xf32>
    %496 = arith.negf %495 : vector<2x64xf32>
    %497 = math.exp %496 : vector<2x64xf32>
    %cst_92 = arith.constant 1.000000e+00 : f32
    %498 = vector.broadcast %cst_92 : f32 to vector<2x64xf32>
    %499 = arith.addf %498, %497 : vector<2x64xf32>
    %500 = arith.divf %498, %499 : vector<2x64xf32>
    %501 = vector.extract_strided_slice %500 {offsets = [0, 0], sizes = [2, 32], strides = [1, 1]} : vector<2x64xf32> to vector<2x32xf32>
    %502 = vector.extract_strided_slice %500 {offsets = [0, 32], sizes = [2, 32], strides = [1, 1]} : vector<2x64xf32> to vector<2x32xf32>
    %503 = vector.extract_strided_slice %492 {offsets = [0, 64], sizes = [2, 32], strides = [1, 1]} : vector<2x96xf32> to vector<2x32xf32>
    %504 = vector.extract_strided_slice %487 {offsets = [0, 64], sizes = [2, 32], strides = [1, 1]} : vector<2x96xf32> to vector<2x32xf32>
    %505 = arith.mulf %501, %504 : vector<2x32xf32>
    %506 = arith.addf %503, %505 : vector<2x32xf32>
    %507 = math.tanh %506 : vector<2x32xf32>
    %cst_93 = arith.constant 1.000000e+00 : f32
    %508 = vector.broadcast %cst_93 : f32 to vector<2x32xf32>
    %509 = arith.subf %508, %502 : vector<2x32xf32>
    %510 = arith.mulf %509, %507 : vector<2x32xf32>
    %511 = arith.mulf %502, %479 : vector<2x32xf32>
    %512 = arith.addf %510, %511 : vector<2x32xf32>
    %513 = vector.extract_strided_slice %512 {offsets = [0, 0], sizes = [1, 32], strides = [1, 1]} : vector<2x32xf32> to vector<1x32xf32>
    %c7 = arith.constant 7 : index
    %c0_94 = arith.constant 0 : index
    %514 = vector.load %arg18[%c7, %c0_94] : memref<16x32xf32, #tpu.memory_space<vmem>>, vector<1x32xf32>
    tpu.vector_store %arg18[%c7, %c0_94], %513 {strides = array<i32>} : memref<16x32xf32, #tpu.memory_space<vmem>>, vector<1x32xf32>,
    %515 = vector.extract_strided_slice %512 {offsets = [1, 0], sizes = [1, 32], strides = [1, 1]} : vector<2x32xf32> to vector<1x32xf32>
    %c15 = arith.constant 15 : index
    %c0_95 = arith.constant 0 : index
    %516 = vector.load %arg18[%c15, %c0_95] : memref<16x32xf32, #tpu.memory_space<vmem>>, vector<1x32xf32>
    tpu.vector_store %arg18[%c15, %c0_95], %515 {strides = array<i32>} : memref<16x32xf32, #tpu.memory_space<vmem>>, vector<1x32xf32>,
    %c0_96 = arith.constant 0 : index
    %c0_97 = arith.constant 0 : index
    %517 = vector.load %arg15[%c0_96, %c0_97] : memref<32x2xf32, #tpu.memory_space<vmem>>, vector<32x2xf32>
    %c0_98 = arith.constant 0 : index
    %c0_99 = arith.constant 0 : index
    %518 = vector.load %arg16[%c0_98, %c0_99] : memref<1x2xf32, #tpu.memory_space<vmem>>, vector<1x2xf32>
    %c0_100 = arith.constant 0 : index
    %c0_101 = arith.constant 0 : index
    %519 = vector.load %arg18[%c0_100, %c0_101] : memref<16x32xf32, #tpu.memory_space<vmem>>, vector<16x32xf32>
    %cst_102 = arith.constant dense<0.000000e+00> : vector<16x2xf32>
    %520 = tpu.matmul %519, %517, %cst_102 {dimension_numbers = #tpu.dot_dimension_numbers<[1], [0], [0], [1], [0, 0, 1, 1], [], []>} : vector<16x32xf32>, vector<32x2xf32>, vector<16x2xf32> -> vector<16x2xf32>
    %521 = vector.broadcast %518 : vector<1x2xf32> to vector<16x2xf32>
    %522 = arith.addf %520, %521 : vector<16x2xf32>
    %c0_103 = arith.constant 0 : index
    %c0_104 = arith.constant 0 : index
    %523 = vector.load %arg2[%c0_103, %c0_104] : memref<16x1xf32, #tpu.memory_space<vmem>>, vector<16x1xf32>
    %524 = vector.broadcast %523 : vector<16x1xf32> to vector<16x2xf32>
    %525 = arith.mulf %522, %524 : vector<16x2xf32>
    %526 = vector.extract_strided_slice %525 {offsets = [0, 0], sizes = [8, 2], strides = [1, 1]} : vector<16x2xf32> to vector<8x2xf32>
    %cst_105 = arith.constant dense<0xFF800000> : vector<2xf32>
    %527 = vector.multi_reduction <maximumf>, %526, %cst_105 [0] : vector<8x2xf32> to vector<2xf32>
    %528 = vector.shape_cast %527 : vector<2xf32> to vector<1x2xf32>
    %529 = vector.broadcast %528 : vector<1x2xf32> to vector<8x2xf32>
    %530 = arith.subf %526, %529 : vector<8x2xf32>
    %531 = math.exp %530 : vector<8x2xf32>
    %cst_106 = arith.constant dense<0.000000e+00> : vector<2xf32>
    %532 = vector.multi_reduction <add>, %531, %cst_106 [0] : vector<8x2xf32> to vector<2xf32>
    %533 = vector.shape_cast %532 : vector<2xf32> to vector<1x2xf32>
    %534 = vector.broadcast %533 : vector<1x2xf32> to vector<8x2xf32>
    %535 = arith.divf %531, %534 : vector<8x2xf32>
    %c0_107 = arith.constant 0 : index
    %c0_108 = arith.constant 0 : index
    %c0_109 = arith.constant 0 : index
    %536 = vector.load %arg17[%c0_107, %c0_108, %c0_109] : memref<2x8x2xf32, #tpu.memory_space<vmem>>, vector<1x8x2xf32>
    %537 = vector.shape_cast %536 : vector<1x8x2xf32> to vector<8x2xf32>
    %538 = vector.shape_cast %535 : vector<8x2xf32> to vector<1x8x2xf32>
    tpu.vector_store %arg17[%c0_107, %c0_108, %c0_109], %538 {strides = array<i32>} : memref<2x8x2xf32, #tpu.memory_space<vmem>>, vector<1x8x2xf32>,
    %539 = vector.extract_strided_slice %525 {offsets = [8, 0], sizes = [8, 2], strides = [1, 1]} : vector<16x2xf32> to vector<8x2xf32>
    %cst_110 = arith.constant dense<0xFF800000> : vector<2xf32>
    %540 = vector.multi_reduction <maximumf>, %539, %cst_110 [0] : vector<8x2xf32> to vector<2xf32>
    %541 = vector.shape_cast %540 : vector<2xf32> to vector<1x2xf32>
    %542 = vector.broadcast %541 : vector<1x2xf32> to vector<8x2xf32>
    %543 = arith.subf %539, %542 : vector<8x2xf32>
    %544 = math.exp %543 : vector<8x2xf32>
    %cst_111 = arith.constant dense<0.000000e+00> : vector<2xf32>
    %545 = vector.multi_reduction <add>, %544, %cst_111 [0] : vector<8x2xf32> to vector<2xf32>
    %546 = vector.shape_cast %545 : vector<2xf32> to vector<1x2xf32>
    %547 = vector.broadcast %546 : vector<1x2xf32> to vector<8x2xf32>
    %548 = arith.divf %544, %547 : vector<8x2xf32>
    %c1_112 = arith.constant 1 : index
    %c0_113 = arith.constant 0 : index
    %c0_114 = arith.constant 0 : index
    %549 = vector.load %arg17[%c1_112, %c0_113, %c0_114] : memref<2x8x2xf32, #tpu.memory_space<vmem>>, vector<1x8x2xf32>
    %550 = vector.shape_cast %549 : vector<1x8x2xf32> to vector<8x2xf32>
    %551 = vector.shape_cast %548 : vector<8x2xf32> to vector<1x8x2xf32>
    tpu.vector_store %arg17[%c1_112, %c0_113, %c0_114], %551 {strides = array<i32>} : memref<2x8x2xf32, #tpu.memory_space<vmem>>, vector<1x8x2xf32>,
    return
  }
}

</mosaic_0001>

<bundles_post_ra>
// kernel: net_forward.1
= control target key start
LH: loop header
LB: loop body
LE: loop exit
PB: predicated region body
PF: predicated region fallthrough
CT: control target
= control target key end

     0   :  { %s3624_s0 = inlined_call_operand.vmem [shape: f32[2,8], index: 0, kind: input, shape index: {}]   ;;  %s3625_s1 = inlined_call_operand.vmem [shape: f32[2,8], index: 1, kind: input, shape index: {}]   ;;  %s3626_s2 = inlined_call_operand.vmem [shape: f32[16,1], index: 2, kind: input, shape index: {}]   ;;  %s3627_s3 = inlined_call_operand.vmem [shape: f32[1,8], index: 3, kind: input, shape index: {}]   ;;  %s3628_s4 = inlined_call_operand.hbm [shape: f32[1,8], index: 4, kind: input, shape index: {}]   ;;  %s3629_s5 = inlined_call_operand.vmem [shape: f32[8,96], index: 5, kind: input, shape index: {}]   ;;  %s3630_s6 = inlined_call_operand.vmem [shape: f32[32,96], index: 6, kind: input, shape index: {}]   ;;  %s3631_s7 = inlined_call_operand.vmem [shape: f32[1,96], index: 7, kind: input, shape index: {}]   ;;  %s3632_s8 = inlined_call_operand.hbm [shape: f32[1,96], index: 8, kind: input, shape index: {}]   ;;  %s3633_s9 = inlined_call_operand.vmem [shape: f32[1,8], index: 9, kind: input, shape index: {}]   ;;  %s3634_s10 = inlined_call_operand.hbm [shape: f32[1,8], index: 10, kind: input, shape index: {}]   ;;  %s3635_s11 = inlined_call_operand.vmem [shape: f32[8,96], index: 11, kind: input, shape index: {}]   ;;  %s3636_s12 = inlined_call_operand.vmem [shape: f32[32,96], index: 12, kind: input, shape index: {}]   ;;  %s3637_s13 = inlined_call_operand.hbm [shape: f32[1,96], index: 13, kind: input, shape index: {}]   ;;  %s3638_s14 = inlined_call_operand.hbm [shape: f32[1,96], index: 14, kind: input, shape index: {}]   ;;  %s3639_s15 = inlined_call_operand.vmem [shape: f32[32,2], index: 15, kind: input, shape index: {}]   ;;  %s3640_s16 = inlined_call_operand.vmem [shape: f32[1,2], index: 16, kind: input, shape index: {}]   ;;  %s3641_s17 = inlined_call_operand.vmem [shape: f32[2,8,2], index: 17, kind: output, shape index: {}]  }
   0x1   :  { %3642 = sst [smem:[#allocation14_spill]] %s3624_s0 }
   0x2   :  { %3643 = sst [smem:[#allocation15_spill]] %s3625_s1 }
   0x3   :  { %22 = vsyncpa [#allocation4], 0 }
   0x4   :  { %23 = vsyncpa [#allocation6], 0 }
   0x5   :  { %24 = vsyncpa [#allocation9], 0  ;;  %s3056_s24 = smov [#allocation5]   ;;  %s3057_s26 = smov [#allocation8]  }
   0x6   :  { %s55_s25 = sshll.u32 %s3056_s24, 4  ;;  %s81_s27 = sshll.u32 %s3057_s26, 4  ;;  %s56_s25 = int_to_ptr.vmem [resolvable:$true] %s55_s25  ;;  %s82_s27 = int_to_ptr.vmem [resolvable:$true] %s81_s27 }
   0x7   :  { %s2940_s0 = scalar_lea.hbm %s3632_s8, 16 }
   0x8   :  { %p2941_p0 = scmp.ne.s32.totalorder %s3632_s8, %s2940_s0  ;;  %p2944_p1 = scmp.lt.u32.totalorder %s2940_s0, %s3632_s8 }
   0xa   :  { %p2946_p2 = pnand %p2944_p1, %p2941_p0 }
   0xc   :  { %2949 = shalt.err (!%p2946_p2)
}
   0xd   :  { %s2950_s20 = scalar_lea.vmem %s56_s25, 16  ;;  %s2954_s21 = scalar_lea.vmem %s56_s25, 32 }
   0xe   :  { %p2951_p3 = scmp.ne.s32.totalorder %s56_s25, %s2950_s20  ;;  %p2955_p4 = scmp.lt.s32.totalorder %s56_s25, %s56_s25 }
   0xf   :  { %p2956_p5 = scmp.lt.s32.totalorder %s2954_s21, %s2950_s20 }
  0x11   :  { %p2957_p6 = por %p2956_p5, %p2955_p4 }
  0x13   :  { %p2958_p7 = pnand %p2957_p6, %p2951_p3 }
  0x15   :  { %2961 = shalt.err (!%p2958_p7)
}
  0x16   :  { %58 = dma.hbm_to_vmem [thread:$0]  %s3632_s8, 16, %s56_s25, [#allocation6]  }
  0x17   :  { %s2962_s28 = scalar_lea.hbm %s3637_s13, 16 }
  0x18   :  { %p2963_p8 = scmp.ne.s32.totalorder %s3637_s13, %s2962_s28  ;;  %p2966_p9 = scmp.lt.u32.totalorder %s2962_s28, %s3637_s13 }
  0x1a   :  { %p2968_p10 = pnand %p2966_p9, %p2963_p8 }
  0x1c   :  { %2971 = shalt.err (!%p2968_p10)
}
  0x1d   :  { %s2972_s19 = scalar_lea.vmem %s82_s27, 16  ;;  %s2976_s1 = scalar_lea.vmem %s82_s27, 32 }
  0x1e   :  { %p2973_p11 = scmp.ne.s32.totalorder %s82_s27, %s2972_s19  ;;  %p2977_p12 = scmp.lt.s32.totalorder %s82_s27, %s82_s27 }
  0x1f   :  { %p2978_p13 = scmp.lt.s32.totalorder %s2976_s1, %s2972_s19 }
  0x21   :  { %p2979_p0 = por %p2978_p13, %p2977_p12 }
  0x23   :  { %p2980_p1 = pnand %p2979_p0, %p2973_p11 }
  0x25   :  { %2983 = shalt.err (!%p2980_p1)
}
  0x26   :  { %84 = dma.hbm_to_vmem [thread:$0]  %s3637_s13, 16, %s82_s27, [#allocation9]  }
  0x27   :  { %s3058_s20 = smov [#allocation3]   ;;  %s3059_s22 = smov [#allocation7]  }
  0x28   :  { %s39_s21 = sshll.u32 %s3058_s20, 4  ;;  %s67_s23 = sshll.u32 %s3059_s22, 4  ;;  %s40_s21 = int_to_ptr.vmem [resolvable:$true] %s39_s21  ;;  %s68_s23 = int_to_ptr.vmem [resolvable:$true] %s67_s23 }
  0x29   :  { %s2984_s28 = scalar_lea.hbm %s3628_s4, 16 }
  0x2a   :  { %p2985_p2 = scmp.ne.s32.totalorder %s3628_s4, %s2984_s28  ;;  %p2988_p3 = scmp.lt.u32.totalorder %s2984_s28, %s3628_s4 }
  0x2c   :  { %p2990_p4 = pnand %p2988_p3, %p2985_p2 }
  0x2e   :  { %2993 = shalt.err (!%p2990_p4)
}
  0x2f   :  { %s2994_s13 = scalar_lea.vmem %s40_s21, 16  ;;  %s2998_s27 = scalar_lea.vmem %s40_s21, 32 }
  0x30   :  { %p2995_p5 = scmp.ne.s32.totalorder %s40_s21, %s2994_s13  ;;  %p2999_p6 = scmp.lt.s32.totalorder %s40_s21, %s40_s21 }
  0x31   :  { %p3000_p7 = scmp.lt.s32.totalorder %s2998_s27, %s2994_s13 }
  0x33   :  { %p3001_p8 = por %p3000_p7, %p2999_p6 }
  0x35   :  { %p3002_p9 = pnand %p3001_p8, %p2995_p5 }
  0x37   :  { %3005 = shalt.err (!%p3002_p9)
}
  0x38   :  { %42 = dma.hbm_to_vmem [thread:$0]  %s3628_s4, 16, %s40_s21, [#allocation4]  }
  0x39   :  { %s3006_s20 = scalar_lea.hbm %s3634_s10, 16 }
  0x3a   :  { %p3007_p10 = scmp.ne.s32.totalorder %s3634_s10, %s3006_s20  ;;  %p3010_p11 = scmp.lt.u32.totalorder %s3006_s20, %s3634_s10 }
  0x3c   :  { %p3012_p12 = pnand %p3010_p11, %p3007_p10 }
  0x3e   :  { %3015 = shalt.err (!%p3012_p12)
}
  0x3f   :  { %s3016_s29 = scalar_lea.vmem %s68_s23, 16  ;;  %s3020_s0 = scalar_lea.vmem %s68_s23, 32 }
  0x40   :  { %p3017_p13 = scmp.ne.s32.totalorder %s68_s23, %s3016_s29  ;;  %p3021_p0 = scmp.lt.s32.totalorder %s68_s23, %s68_s23 }
  0x41   :  { %p3022_p1 = scmp.lt.s32.totalorder %s3020_s0, %s3016_s29 }
  0x43   :  { %p3023_p2 = por %p3022_p1, %p3021_p0 }
  0x45   :  { %p3024_p3 = pnand %p3023_p2, %p3017_p13 }
  0x47   :  { %3027 = shalt.err (!%p3024_p3)
}
  0x48   :  { %70 = dma.hbm_to_vmem [thread:$0]  %s3634_s10, 16, %s68_s23, [#allocation6]  }
  0x49   :  { %s3060_s30 = smov [#allocation10]   ;;  %s3028_s19 = scalar_lea.hbm %s3638_s14, 16 }
  0x4a   :  { %s91_s18 = sshll.u32 %s3060_s30, 4  ;;  %p3029_p4 = scmp.ne.s32.totalorder %s3638_s14, %s3028_s19  ;;  %s92_s18 = int_to_ptr.vmem [resolvable:$true] %s91_s18 }
  0x4b   :  { %p3032_p5 = scmp.lt.u32.totalorder %s3028_s19, %s3638_s14 }
  0x4d   :  { %p3034_p6 = pnand %p3032_p5, %p3029_p4 }
  0x4f   :  { %3037 = shalt.err (!%p3034_p6)
}
  0x50   :  { %s3038_s22 = scalar_lea.vmem %s92_s18, 16  ;;  %s3042_s10 = scalar_lea.vmem %s92_s18, 32 }
  0x51   :  { %p3039_p7 = scmp.ne.s32.totalorder %s92_s18, %s3038_s22  ;;  %p3043_p8 = scmp.lt.s32.totalorder %s92_s18, %s92_s18 }
  0x52   :  { %p3044_p9 = scmp.lt.s32.totalorder %s3042_s10, %s3038_s22 }
  0x54   :  { %p3045_p10 = por %p3044_p9, %p3043_p8 }
  0x56   :  { %p3046_p11 = pnand %p3045_p10, %p3039_p7 }
  0x58   :  { %3049 = shalt.err (!%p3046_p11)
}
  0x59   :  { %94 = dma.hbm_to_vmem [thread:$0]  %s3638_s14, 16, %s92_s18, [#allocation9]  }
  0x5a   :  { %3050 = dma.done.wait [#allocation4], 16  }
  0x5b   :  { %3051 = vsyncadd [#allocation4], 4294967280 }
  0x5c   :  { %3052 = dma.done.wait [#allocation6], 32  }
  0x5d   :  { %3053 = vsyncadd [#allocation6], 4294967264 }
  0x5e   :  { %3054 = dma.done.wait [#allocation9], 32  }
  0x5f   :  { %3055 = vsyncadd [#allocation9], 4294967264  ;;  %v3061_v0 = vmov 0.0   ;;  %vm3062_vm0 = vmmov 0   ;;  %v3063_v1 = vmov 0   ;;  %vm117_vm1 = vcmask 64512  }
  0x60   :  { %2489 = vmatprep.subr.mxu0 %v3061_v0  ;;  %2491 = vmatprep.mubr.msk.f32.mxu0 %vm3062_vm0, %v3061_v0  ;;  %v116_v2 = vld [vmem:[%s3629_s5] sm:$0xff]  ;;  %v115_v4 = vld [vmem:[#allocation3] sm:$0x1]  ;;  %v266_v6 = vld [vmem:[%s3630_s6 + $0x8] sm:$0xff]  ;;  %v3064_v8 = vmov 0.0|0.0   ;;  %s3644_s1 = sld [smem:[#allocation14_spill]]  ;;  %v356_v21 = vlaneseq }
  0x61   :  { %2494 = vmatprep.subr.mxu1 %v3061_v0  ;;  %2496 = vmatprep.mubr.msk.f32.mxu1 %vm3062_vm0, %v3061_v0  ;;  %v114_v3 = vld [vmem:[%s3627_s3] sm:$0x1]  ;;  %v267_v7 = vld [vmem:[%s3630_s6 + $0x10] sm:$0xff]  ;;  %v268_v10 = vld [vmem:[%s3630_s6 + $0x18] sm:$0xff]  ;;  %v3066_v38 = vmov 1   ;;  %vm277_vm2 = vcmask 261120  }
  0x62   :  { %2818 = vset.pattern.permute.xlu0 %v3063_v1  ;;  %2490 = vmatpush3.msra.mxu0 %v116_v2  ;;  %v265_v5 = vld [vmem:[%s3630_s6] sm:$0xff]  ;;  %v3262_v12 = vpack.c.bf16 %v268_v10, %v267_v7  ;;  %v3282_v17 = vld [vmem:[#allocation5] ss:$0 sm:$0xff]  ;;  %s3065_s6 = smov 64   ;;  %v357_v22 = vshrl.u32 %v356_v21, 7  ;;  %v3068_v61 = vmov 2  }
  0x63   :  { %2495 = vmatpush3.msra.mxu1 %v116_v2  ;;  %2492 = vmatmul.mubr.msk.f32.vlgmr.msra.gmra.mrb[0].mxu0 %vm117_vm1, %v114_v3  ;;  %v3248_v9 = vpack.c.bf16 %v266_v6, %v265_v5  ;;  %v191_v24 = vld [vmem:[%s3631_s7] sm:$0x1]  ;;  %s3067_s7 = smov 96   ;;  %s3645_s21 = sld [smem:[#allocation15_spill]]  ;;  %vm1423_vm3 = vcmask 253952   ;;  %vm1425_vm4 = vcmask 254977  }
  0x64   :  { %2696 = vmatprep.subr.bf16.mxu0 %v3064_v8  ;;  %2497 = vmatmul.mubr.msk.f32.vlgmr.msra.gmra.mrb[0].mxu1 %vm117_vm1, %v115_v4  ;;  %v3286_v23 = vsub.s32 0, %v357_v22  ;;  %vm2305_vm5 = vcmask 15360  }
  0x65   :  { %2507 = vmatprep.mubr.msk.f32.mxu0 %vm3062_vm0, %v3061_v0  ;;  %2698 = vmatpush3.bf16.msra.mxu0 %v3248_v9 }
  0x66   :  { %v3256_v11 = vld [vmem:[%s3644_s1] sm:$0x3]  ;;  %2699 = vmatprep.subr.bf16.mxu0 %v3064_v8  ;;  %2702 = vmatprep.subr.bf16.mxu1 %v3064_v8 }
  0x67   :  { %353 = vperm.xlu0 %2818, %v3256_v11   ;;  %2704 = vmatpush3.bf16.msra.mxu1 %v3248_v9 }
  0x68   :  { %2518 = vmatprep.mubr.msk.f32.mxu1 %vm3062_vm0, %v3061_v0  ;;  %2705 = vmatprep.subr.bf16.mxu1 %v3064_v8 }
  0x69   :  { %2701 = vmatpush3.bf16.msra.mxu0 %v3262_v12  ;;  %2819 = vset.pattern.permute.xlu1 %v3066_v38 }
  0x6a   :  { %2708 = vmatprep.subr.bf16.mxu0 %v3064_v8 }
  0x6b   :  { %2707 = vmatpush3.bf16.msra.mxu1 %v3262_v12  ;;  %2820 = vset.pattern.permute.xlu0 %v3068_v61 }
  0x6c   :  { %2508 = vmatmul.mubr.f32.vlgmr.msra.gmra.mrb[2].mxu0 %v3061_v0  ;;  %2714 = vmatprep.subr.bf16.mxu1 %v3064_v8 }
  0x6d   :  { %2710 = vmatpush3.bf16.msra.mxu0 %v3248_v9  ;;  %2529 = vmatprep.mubr.msk.f32.mxu0 %vm3062_vm0, %v3061_v0 }
  0x6e   :  { %2711 = vmatprep.subr.bf16.mxu0 %v3064_v8 }
  0x71   :  { %2713 = vmatpush3.bf16.msra.mxu0 %v3262_v12 }
  0x72   :  { %2720 = vmatprep.subr.bf16.mxu0 %v3064_v8 }
  0xe6   :  { %v354_v27 = vpop.permute.xlu0 %353 }
 0x136   :  { %v187_v13 = vpop.f32.mrb[0].mxu0 }
 0x137   :  { %v2493_v14 = vpop.f32.mrb[1].mxu0  ;;  %v261_v15 = vpop.f32.mrb[0].mxu1  ;;  %v3292_v25 = vrot.slane %v187_v13, %v3286_v23 }
 0x138   :  { %v2498_v16 = vpop.f32.mrb[1].mxu1  ;;  %v262_v26 = vadd.f32 %v261_v15, %v191_v24 }
 0x139   :  { %v360_v29 = vmul.f32 %v3292_v25, %v354_v27 }
 0x13a   :  { %v3295_v28 = vrot.slane %v262_v26, %v3286_v23 }
 0x13c   :  { %v365_v30 = vadd.f32 %v3295_v28, %v360_v29 }
 0x13f   :  { %v347_v18 = vpop.f32.mrb[2].mxu0 }
 0x140   :  { %v348_v19 = vadd.f32 %v3282_v17, %v347_v18  ;;  %v2509_v20 = vpop.f32.mrb[3].mxu0 }
 0x142   :  { %374 = vrot.lane.b32.xlu0 %v348_v19, %s3065_s6  ;;  %v366_v31 = vadd.f32 %v365_v30, %v348_v19 }
 0x144   :  { %v2357_v32 = vmul.f32 -1.442695, %v366_v31 }
 0x146   :  { %2836 = vpow2.f32 %v2357_v32 }
 0x150   :  { %v2837_v33 = vpop.eup %2836 }
 0x151   :  { %v370_v34 = vadd.f32 1.0, %v2837_v33 }
 0x153   :  { %2838 = vrcp.f32 %v370_v34 }
 0x15d   :  { %v2839_v35 = vpop.eup %2838 }
 0x15e   :  { %v384_v42 = vsub.f32 1.0, %v2839_v35  ;;  %v390_v44 = vmul.f32 0.0, %v2839_v35 }
 0x1b4   :  { %v375_v36 = vpop.permute.xlu0 %374 }
 0x1b5   :  { %v377_v37 = vmul.f32 %v2839_v35, %v375_v36 }
 0x1b7   :  { %379 = vrot.lane.b32.xlu1 %v377_v37, %s3065_s6 }
 0x229   :  { %v380_v39 = vpop.permute.xlu1 %379 }
 0x22a   :  { %v382_v40 = vadd.f32 %v380_v39, %v365_v30  ;;  %v3069_v30 = vmov 3  }
 0x22c   :  { %2840 = vtanh.f32 %v382_v40 }
 0x236   :  { %v2841_v41 = vpop.eup %2840 }
 0x237   :  { %386 = vrot.lane.b32.xlu1 %v2841_v41, %s3067_s7 }
 0x23b   :  { %468 = vperm.xlu1 %2819, %v3256_v11  }
 0x23f   :  { %2835 = vset.pattern.permute.xlu1 %v3063_v1 }
 0x2a9   :  { %v387_v43 = vpop.permute.xlu1 %386 }
 0x2aa   :  { %v389_v45 = vmul.f32 %v387_v43, %v384_v42 }
 0x2ac   :  { %v391_v46 = vadd.f32 %v390_v44, %v389_v45 }
 0x2ae   :  { %393 = vrot.lane.b32.xlu0 %v391_v46, %s3067_s7 }
 0x2ba   :  { %v469_v51 = vpop.permute.xlu1 %468 }
 0x2bb   :  { %v471_v52 = vmul.f32 %v469_v51, %v3292_v25 }
 0x2bd   :  { %v472_v53 = vadd.f32 %v471_v52, %v3295_v28 }
 0x320   :  { %v394_v47 = vpop.permute.xlu0 %393 }
 0x321   :  { %2519 = vmatmul.mubr.msk.f32.vlgmr.msra.gmra.mrb[2].mxu1 %vm277_vm2, %v394_v47 }
 0x322   :  { %2716 = vmatpush3.bf16.msra.mxu1 %v3248_v9  ;;  %2540 = vmatprep.mubr.msk.f32.mxu1 %vm3062_vm0, %v3061_v0 }
 0x323   :  { %2717 = vmatprep.subr.bf16.mxu1 %v3064_v8 }
 0x326   :  { %2719 = vmatpush3.bf16.msra.mxu1 %v3262_v12 }
 0x327   :  { %2726 = vmatprep.subr.bf16.mxu1 %v3064_v8 }
 0x3f4   :  { %v463_v48 = vpop.f32.mrb[2].mxu1 }
 0x3f5   :  { %v464_v49 = vadd.f32 %v3282_v17, %v463_v48  ;;  %v2520_v50 = vpop.f32.mrb[3].mxu1 }
 0x3f7   :  { %481 = vrot.lane.b32.xlu0 %v464_v49, %s3065_s6  ;;  %v473_v54 = vadd.f32 %v472_v53, %v464_v49 }
 0x3f9   :  { %v2359_v55 = vmul.f32 -1.442695, %v473_v54  ;;  %v3070_v54 = vmov 4  }
 0x3fb   :  { %2842 = vpow2.f32 %v2359_v55 }
 0x405   :  { %v2843_v56 = vpop.eup %2842 }
 0x406   :  { %v477_v57 = vadd.f32 1.0, %v2843_v56 }
 0x408   :  { %2844 = vrcp.f32 %v477_v57 }
 0x412   :  { %v2845_v58 = vpop.eup %2844 }
 0x413   :  { %v491_v3 = vsub.f32 1.0, %v2845_v58  ;;  %v497_v5 = vmul.f32 %v2845_v58, %v391_v46 }
 0x469   :  { %v482_v59 = vpop.permute.xlu0 %481 }
 0x46a   :  { %v484_v60 = vmul.f32 %v2845_v58, %v482_v59 }
 0x46c   :  { %486 = vrot.lane.b32.xlu1 %v484_v60, %s3065_s6 }
 0x4de   :  { %v487_v62 = vpop.permute.xlu1 %486 }
 0x4df   :  { %v489_v63 = vadd.f32 %v487_v62, %v472_v53 }
 0x4e1   :  { %2846 = vtanh.f32 %v489_v63 }
 0x4eb   :  { %v2847_v2 = vpop.eup %2846 }
 0x4ec   :  { %493 = vrot.lane.b32.xlu0 %v2847_v2, %s3067_s7 }
 0x4f0   :  { %575 = vperm.xlu0 %2820, %v3256_v11  }
 0x4f4   :  { %2821 = vset.pattern.permute.xlu0 %v3069_v30 }
 0x55e   :  { %v494_v4 = vpop.permute.xlu0 %493 }
 0x55f   :  { %v496_v6 = vmul.f32 %v494_v4, %v491_v3 }
 0x561   :  { %v498_v7 = vadd.f32 %v497_v5, %v496_v6 }
 0x563   :  { %500 = vrot.lane.b32.xlu1 %v498_v7, %s3067_s7 }
 0x56f   :  { %v576_v16 = vpop.permute.xlu0 %575 }
 0x570   :  { %v578_v18 = vmul.f32 %v576_v16, %v3292_v25 }
 0x572   :  { %v579_v19 = vadd.f32 %v578_v18, %v3295_v28 }
 0x5d5   :  { %v501_v10 = vpop.permute.xlu1 %500 }
 0x5d6   :  { %2530 = vmatmul.mubr.msk.f32.vlgmr.msra.gmra.mrb[4].mxu0 %vm277_vm2, %v501_v10 }
 0x5d7   :  { %2722 = vmatpush3.bf16.msra.mxu0 %v3248_v9  ;;  %2551 = vmatprep.mubr.msk.f32.mxu0 %vm3062_vm0, %v3061_v0 }
 0x5d8   :  { %2723 = vmatprep.subr.bf16.mxu0 %v3064_v8 }
 0x5db   :  { %2725 = vmatpush3.bf16.msra.mxu0 %v3262_v12 }
 0x5dc   :  { %2732 = vmatprep.subr.bf16.mxu0 %v3064_v8 }
 0x6a9   :  { %v570_v13 = vpop.f32.mrb[4].mxu0 }
 0x6aa   :  { %v571_v14 = vadd.f32 %v3282_v17, %v570_v13  ;;  %v2531_v15 = vpop.f32.mrb[5].mxu0 }
 0x6ac   :  { %588 = vrot.lane.b32.xlu1 %v571_v14, %s3065_s6  ;;  %v580_v20 = vadd.f32 %v579_v19, %v571_v14 }
 0x6ae   :  { %v2361_v21 = vmul.f32 -1.442695, %v580_v20 }
 0x6b0   :  { %2848 = vpow2.f32 %v2361_v21  ;;  %v3071_v21 = vmov 5  }
 0x6ba   :  { %v2849_v22 = vpop.eup %2848 }
 0x6bb   :  { %v584_v24 = vadd.f32 1.0, %v2849_v22 }
 0x6bd   :  { %2850 = vrcp.f32 %v584_v24 }
 0x6c7   :  { %v2851_v26 = vpop.eup %2850 }
 0x6c8   :  { %v598_v34 = vsub.f32 1.0, %v2851_v26  ;;  %v604_v36 = vmul.f32 %v2851_v26, %v498_v7 }
 0x71e   :  { %v589_v27 = vpop.permute.xlu1 %588 }
 0x71f   :  { %v591_v29 = vmul.f32 %v2851_v26, %v589_v27 }
 0x721   :  { %593 = vrot.lane.b32.xlu1 %v591_v29, %s3065_s6 }
 0x793   :  { %v594_v31 = vpop.permute.xlu1 %593 }
 0x794   :  { %v596_v32 = vadd.f32 %v594_v31, %v579_v19 }
 0x796   :  { %2852 = vtanh.f32 %v596_v32 }
 0x7a0   :  { %v2853_v33 = vpop.eup %2852 }
 0x7a1   :  { %600 = vrot.lane.b32.xlu0 %v2853_v33, %s3067_s7 }
 0x7a5   :  { %682 = vperm.xlu0 %2821, %v3256_v11  }
 0x7a9   :  { %2822 = vset.pattern.permute.xlu0 %v3070_v54 }
 0x813   :  { %v601_v35 = vpop.permute.xlu0 %600 }
 0x814   :  { %v603_v37 = vmul.f32 %v601_v35, %v598_v34 }
 0x816   :  { %v605_v39 = vadd.f32 %v604_v36, %v603_v37 }
 0x818   :  { %607 = vrot.lane.b32.xlu1 %v605_v39, %s3067_s7 }
 0x824   :  { %v683_v44 = vpop.permute.xlu0 %682 }
 0x825   :  { %v685_v45 = vmul.f32 %v683_v44, %v3292_v25 }
 0x827   :  { %v686_v46 = vadd.f32 %v685_v45, %v3295_v28 }
 0x88a   :  { %v608_v40 = vpop.permute.xlu1 %607 }
 0x88b   :  { %2541 = vmatmul.mubr.msk.f32.vlgmr.msra.gmra.mrb[4].mxu1 %vm277_vm2, %v608_v40 }
 0x88c   :  { %2728 = vmatpush3.bf16.msra.mxu1 %v3248_v9  ;;  %2562 = vmatprep.mubr.msk.f32.mxu1 %vm3062_vm0, %v3061_v0 }
 0x88d   :  { %2729 = vmatprep.subr.bf16.mxu1 %v3064_v8 }
 0x890   :  { %2731 = vmatpush3.bf16.msra.mxu1 %v3262_v12 }
 0x891   :  { %2738 = vmatprep.subr.bf16.mxu1 %v3064_v8 }
 0x95e   :  { %v677_v41 = vpop.f32.mrb[4].mxu1 }
 0x95f   :  { %v678_v42 = vadd.f32 %v3282_v17, %v677_v41  ;;  %v2542_v43 = vpop.f32.mrb[5].mxu1 }
 0x961   :  { %695 = vrot.lane.b32.xlu1 %v678_v42, %s3065_s6  ;;  %v687_v47 = vadd.f32 %v686_v46, %v678_v42 }
 0x963   :  { %v2363_v48 = vmul.f32 -1.442695, %v687_v47  ;;  %v3072_v47 = vmov 6  }
 0x965   :  { %2854 = vpow2.f32 %v2363_v48 }
 0x96f   :  { %v2855_v49 = vpop.eup %2854 }
 0x970   :  { %v691_v50 = vadd.f32 1.0, %v2855_v49 }
 0x972   :  { %2856 = vrcp.f32 %v691_v50 }
 0x97c   :  { %v2857_v51 = vpop.eup %2856 }
 0x97d   :  { %v705_v58 = vsub.f32 1.0, %v2857_v51  ;;  %v711_v60 = vmul.f32 %v2857_v51, %v605_v39 }
 0x9d3   :  { %v696_v52 = vpop.permute.xlu1 %695 }
 0x9d4   :  { %v698_v53 = vmul.f32 %v2857_v51, %v696_v52 }
 0x9d6   :  { %700 = vrot.lane.b32.xlu1 %v698_v53, %s3065_s6 }
 0xa48   :  { %v701_v55 = vpop.permute.xlu1 %700 }
 0xa49   :  { %v703_v56 = vadd.f32 %v701_v55, %v686_v46 }
 0xa4b   :  { %2858 = vtanh.f32 %v703_v56 }
 0xa55   :  { %v2859_v57 = vpop.eup %2858 }
 0xa56   :  { %707 = vrot.lane.b32.xlu0 %v2859_v57, %s3067_s7 }
 0xa5a   :  { %789 = vperm.xlu0 %2822, %v3256_v11  }
 0xa5e   :  { %2823 = vset.pattern.permute.xlu0 %v3071_v21 }
 0xac8   :  { %v708_v59 = vpop.permute.xlu0 %707 }
 0xac9   :  { %v710_v62 = vmul.f32 %v708_v59, %v705_v58 }
 0xacb   :  { %v712_v63 = vadd.f32 %v711_v60, %v710_v62 }
 0xacd   :  { %714 = vrot.lane.b32.xlu1 %v712_v63, %s3067_s7 }
 0xad9   :  { %v790_v6 = vpop.permute.xlu0 %789 }
 0xada   :  { %v792_v7 = vmul.f32 %v790_v6, %v3292_v25 }
 0xadc   :  { %v793_v10 = vadd.f32 %v792_v7, %v3295_v28 }
 0xb3f   :  { %v715_v2 = vpop.permute.xlu1 %714 }
 0xb40   :  { %2552 = vmatmul.mubr.msk.f32.vlgmr.msra.gmra.mrb[6].mxu0 %vm277_vm2, %v715_v2 }
 0xb41   :  { %2734 = vmatpush3.bf16.msra.mxu0 %v3248_v9  ;;  %2573 = vmatprep.mubr.msk.f32.mxu0 %vm3062_vm0, %v3061_v0 }
 0xb42   :  { %2735 = vmatprep.subr.bf16.mxu0 %v3064_v8 }
 0xb45   :  { %2737 = vmatpush3.bf16.msra.mxu0 %v3262_v12 }
 0xb46   :  { %2744 = vmatprep.subr.bf16.mxu0 %v3064_v8 }
 0xc13   :  { %v784_v3 = vpop.f32.mrb[6].mxu0 }
 0xc14   :  { %v785_v4 = vadd.f32 %v3282_v17, %v784_v3  ;;  %v2553_v5 = vpop.f32.mrb[7].mxu0 }
 0xc16   :  { %802 = vrot.lane.b32.xlu1 %v785_v4, %s3065_s6  ;;  %v794_v13 = vadd.f32 %v793_v10, %v785_v4 }
 0xc18   :  { %v2365_v14 = vmul.f32 -1.442695, %v794_v13 }
 0xc1a   :  { %2860 = vpow2.f32 %v2365_v14  ;;  %v3073_v14 = vmov 7  }
 0xc24   :  { %v2861_v15 = vpop.eup %2860 }
 0xc25   :  { %v798_v16 = vadd.f32 1.0, %v2861_v15 }
 0xc27   :  { %2862 = vrcp.f32 %v798_v16 }
 0xc31   :  { %v2863_v18 = vpop.eup %2862 }
 0xc32   :  { %v812_v27 = vsub.f32 1.0, %v2863_v18  ;;  %v818_v31 = vmul.f32 %v2863_v18, %v712_v63 }
 0xc88   :  { %v803_v19 = vpop.permute.xlu1 %802 }
 0xc89   :  { %v805_v20 = vmul.f32 %v2863_v18, %v803_v19 }
 0xc8b   :  { %807 = vrot.lane.b32.xlu1 %v805_v20, %s3065_s6 }
 0xcfd   :  { %v808_v22 = vpop.permute.xlu1 %807 }
 0xcfe   :  { %v810_v24 = vadd.f32 %v808_v22, %v793_v10 }
 0xd00   :  { %2864 = vtanh.f32 %v810_v24 }
 0xd0a   :  { %v2865_v26 = vpop.eup %2864 }
 0xd0b   :  { %814 = vrot.lane.b32.xlu0 %v2865_v26, %s3067_s7 }
 0xd0f   :  { %896 = vperm.xlu0 %2823, %v3256_v11  }
 0xd13   :  { %2824 = vset.pattern.permute.xlu0 %v3072_v47 }
 0xd7d   :  { %v815_v29 = vpop.permute.xlu0 %814 }
 0xd7e   :  { %v817_v32 = vmul.f32 %v815_v29, %v812_v27 }
 0xd80   :  { %v819_v33 = vadd.f32 %v818_v31, %v817_v32 }
 0xd82   :  { %821 = vrot.lane.b32.xlu1 %v819_v33, %s3067_s7 }
 0xd8e   :  { %v897_v39 = vpop.permute.xlu0 %896 }
 0xd8f   :  { %v899_v40 = vmul.f32 %v897_v39, %v3292_v25 }
 0xdf4   :  { %v822_v34 = vpop.permute.xlu1 %821 }
 0xdf5   :  { %2563 = vmatmul.mubr.msk.f32.vlgmr.msra.gmra.mrb[6].mxu1 %vm277_vm2, %v822_v34 }
 0xdf6   :  { %2740 = vmatpush3.bf16.msra.mxu1 %v3248_v9  ;;  %2584 = vmatprep.mubr.msk.f32.mxu1 %vm3062_vm0, %v3061_v0  ;;  %v900_v9 = vadd.f32 %v899_v40, %v3295_v28 }
 0xdf7   :  { %2741 = vmatprep.subr.bf16.mxu1 %v3064_v8 }
 0xdfa   :  { %2743 = vmatpush3.bf16.msra.mxu1 %v3262_v12 }
 0xdfb   :  { %2587 = vmatprep.subr.mxu1 %v3061_v0 }
 0xec8   :  { %v891_v35 = vpop.f32.mrb[6].mxu1 }
 0xec9   :  { %v892_v36 = vadd.f32 %v3282_v17, %v891_v35  ;;  %v2564_v37 = vpop.f32.mrb[7].mxu1 }
 0xecb   :  { %909 = vrot.lane.b32.xlu1 %v892_v36, %s3065_s6  ;;  %v901_v41 = vadd.f32 %v900_v9, %v892_v36 }
 0xecd   :  { %v2367_v42 = vmul.f32 -1.442695, %v901_v41 }
 0xecf   :  { %2866 = vpow2.f32 %v2367_v42 }
 0xed9   :  { %v2867_v43 = vpop.eup %2866 }
 0xeda   :  { %v905_v44 = vadd.f32 1.0, %v2867_v43  ;;  %v1291_v43 = vld [vmem:[%s3636_s12] sm:$0xff] }
 0xedc   :  { %2868 = vrcp.f32 %v905_v44  ;;  %v1292_v44 = vld [vmem:[%s3636_s12 + $0x8] sm:$0xff] }
 0xee6   :  { %v2869_v12 = vpop.eup %2868 }
 0xee7   :  { %v919_v51 = vsub.f32 1.0, %v2869_v12  ;;  %v925_v53 = vmul.f32 %v2869_v12, %v819_v33 }
 0xf3d   :  { %v910_v45 = vpop.permute.xlu1 %909 }
 0xf3e   :  { %v912_v46 = vmul.f32 %v2869_v12, %v910_v45  ;;  %v1293_v12 = vld [vmem:[%s3636_s12 + $0x10] sm:$0xff]  ;;  %v3422_v45 = vpack.c.bf16 %v1292_v44, %v1291_v43 }
 0xf40   :  { %914 = vrot.lane.b32.xlu1 %v912_v46, %s3065_s6  ;;  %v1294_v46 = vld [vmem:[%s3636_s12 + $0x18] sm:$0xff] }
 0xfb2   :  { %v915_v48 = vpop.permute.xlu1 %914 }
 0xfb3   :  { %v917_v49 = vadd.f32 %v915_v48, %v900_v9  ;;  %v1142_v48 = vld [vmem:[#allocation7] sm:$0x1] }
 0xfb5   :  { %2870 = vtanh.f32 %v917_v49  ;;  %v3431_v49 = vpack.c.bf16 %v1294_v46, %v1293_v12 }
 0xfbf   :  { %v2871_v50 = vpop.eup %2870 }
 0xfc0   :  { %921 = vrot.lane.b32.xlu0 %v2871_v50, %s3067_s7 }
 0xfc4   :  { %1003 = vperm.xlu0 %2824, %v3256_v11  }
 0xfc8   :  { %2825 = vset.pattern.permute.xlu0 %v3073_v14 }
0x1032   :  { %v922_v52 = vpop.permute.xlu0 %921 }
0x1033   :  { %v924_v55 = vmul.f32 %v922_v52, %v919_v51  ;;  %v3448_v51 = vld [vmem:[%s3645_s21] sm:$0x3] }
0x1035   :  { %v926_v56 = vadd.f32 %v925_v53, %v924_v55 }
0x1037   :  { %928 = vrot.lane.b32.xlu1 %v926_v56, %s3067_s7 }
0x1043   :  { %v1004_v62 = vpop.permute.xlu0 %1003 }
0x1044   :  { %v1006_v63 = vmul.f32 %v1004_v62, %v3292_v25 }
0x1046   :  { %v1007_v2 = vadd.f32 %v1006_v63, %v3295_v28 }
0x10a9   :  { %v929_v57 = vpop.permute.xlu1 %928 }
0x10aa   :  { %2574 = vmatmul.mubr.msk.f32.vlgmr.msra.gmra.mrb[8].mxu0 %vm277_vm2, %v929_v57 }
0x10ab   :  { %2605 = vmatprep.mubr.msk.f32.mxu0 %vm3062_vm0, %v3061_v0  ;;  %2746 = vmatpush3.bf16.msra.mxu0 %v3422_v45 }
0x10ac   :  { %2747 = vmatprep.subr.bf16.mxu0 %v3064_v8 }
0x10af   :  { %2749 = vmatpush3.bf16.msra.mxu0 %v3431_v49 }
0x10b0   :  { %2756 = vmatprep.subr.bf16.mxu0 %v3064_v8 }
0x117d   :  { %v998_v58 = vpop.f32.mrb[8].mxu0 }
0x117e   :  { %v999_v59 = vadd.f32 %v3282_v17, %v998_v58  ;;  %v2575_v60 = vpop.f32.mrb[9].mxu0 }
0x1180   :  { %1016 = vrot.lane.b32.xlu1 %v999_v59, %s3065_s6  ;;  %v1008_v3 = vadd.f32 %v1007_v2, %v999_v59 }
0x1182   :  { %v2369_v4 = vmul.f32 -1.442695, %v1008_v3 }
0x1184   :  { %2872 = vpow2.f32 %v2369_v4 }
0x118e   :  { %v2873_v5 = vpop.eup %2872 }
0x118f   :  { %v1012_v6 = vadd.f32 1.0, %v2873_v5  ;;  %v1217_v5 = vld [vmem:[#allocation8] sm:$0x1] }
0x1191   :  { %2874 = vrcp.f32 %v1012_v6 }
0x119b   :  { %v2875_v7 = vpop.eup %2874 }
0x119c   :  { %v1026_v19 = vsub.f32 1.0, %v2875_v7  ;;  %v1032_v22 = vmul.f32 %v2875_v7, %v926_v56 }
0x11f2   :  { %v1017_v10 = vpop.permute.xlu1 %1016 }
0x11f3   :  { %v1019_v13 = vmul.f32 %v2875_v7, %v1017_v10 }
0x11f5   :  { %1021 = vrot.lane.b32.xlu1 %v1019_v13, %s3065_s6 }
0x1267   :  { %v1022_v15 = vpop.permute.xlu1 %1021 }
0x1268   :  { %v1024_v16 = vadd.f32 %v1022_v15, %v1007_v2 }
0x126a   :  { %2876 = vtanh.f32 %v1024_v16 }
0x1274   :  { %v2877_v18 = vpop.eup %2876 }
0x1275   :  { %1028 = vrot.lane.b32.xlu0 %v2877_v18, %s3067_s7 }
0x1279   :  { %1110 = vperm.xlu0 %2825, %v3256_v11  }
0x127d   :  { %2826 = vset.pattern.permute.xlu0 %v3063_v1 }
0x12e7   :  { %v1029_v20 = vpop.permute.xlu0 %1028 }
0x12e8   :  { %v1031_v24 = vmul.f32 %v1029_v20, %v1026_v19 }
0x12ea   :  { %v1033_v26 = vadd.f32 %v1032_v22, %v1031_v24 }
0x12ec   :  { %1035 = vrot.lane.b32.xlu1 %v1033_v26, %s3067_s7 }
0x12f8   :  { %v1111_v11 = vpop.permute.xlu0 %1110 }
0x12f9   :  { %v1113_v33 = vmul.f32 %v1111_v11, %v3292_v25  ;;  %v1143_v25 = vld [vmem:[%s3635_s11] sm:$0xff] }
0x12fb   :  { %v1114_v34 = vadd.f32 %v1113_v33, %v3295_v28  ;;  %v1141_v28 = vld [vmem:[%s3633_s9] sm:$0x1] }
0x135e   :  { %v1036_v27 = vpop.permute.xlu1 %1035 }
0x135f   :  { %2585 = vmatmul.mubr.msk.f32.vlgmr.msra.gmra.mrb[8].mxu1 %vm277_vm2, %v1036_v27 }
0x1360   :  { %2589 = vmatprep.mubr.msk.f32.mxu1 %vm3062_vm0, %v3061_v0  ;;  %2588 = vmatpush3.msra.mxu1 %v1143_v25 }
0x1361   :  { %2592 = vmatprep.subr.mxu1 %v3061_v0 }
0x1363   :  { %2590 = vmatmul.mubr.msk.f32.vlgmr.msra.gmra.mrb[10].mxu1 %vm117_vm1, %v1141_v28 }
0x1364   :  { %2593 = vmatpush3.msra.mxu1 %v1143_v25  ;;  %2594 = vmatprep.mubr.msk.f32.mxu1 %vm3062_vm0, %v3061_v0 }
0x1365   :  { %2750 = vmatprep.subr.bf16.mxu1 %v3064_v8 }
0x1367   :  { %2595 = vmatmul.mubr.msk.f32.vlgmr.msra.gmra.mrb[12].mxu1 %vm117_vm1, %v1142_v48 }
0x1368   :  { %2752 = vmatpush3.bf16.msra.mxu1 %v3422_v45  ;;  %2616 = vmatprep.mubr.msk.f32.mxu1 %vm3062_vm0, %v3061_v0 }
0x1369   :  { %2753 = vmatprep.subr.bf16.mxu1 %v3064_v8 }
0x136c   :  { %2755 = vmatpush3.bf16.msra.mxu1 %v3431_v49 }
0x136d   :  { %2762 = vmatprep.subr.bf16.mxu1 %v3064_v8 }
0x1432   :  { %v1105_v29 = vpop.f32.mrb[8].mxu1 }
0x1433   :  { %v1106_v31 = vadd.f32 %v3282_v17, %v1105_v29  ;;  %v2586_v32 = vpop.f32.mrb[9].mxu1 }
0x1435   :  { %1123 = vrot.lane.b32.xlu1 %v1106_v31, %s3065_s6  ;;  %v1115_v35 = vadd.f32 %v1114_v34, %v1106_v31 }
0x1436   :  { %v1213_v58 = vpop.f32.mrb[10].mxu1 }
0x1437   :  { %v2371_v36 = vmul.f32 -1.442695, %v1115_v35  ;;  %v2591_v59 = vpop.f32.mrb[11].mxu1  ;;  %v3465_v6 = vrot.slane %v1213_v58, %v3286_v23 }
0x1439   :  { %2878 = vpow2.f32 %v2371_v36 }
0x143a   :  { %v1287_v60 = vpop.f32.mrb[12].mxu1 }
0x143b   :  { %v2596_v62 = vpop.f32.mrb[13].mxu1  ;;  %v1288_v7 = vadd.f32 %v1287_v60, %v1217_v5 }
0x143d   :  { %v3468_v13 = vrot.slane %v1288_v7, %v3286_v23 }
0x1443   :  { %v2879_v37 = vpop.eup %2878 }
0x1444   :  { %v1119_v39 = vadd.f32 1.0, %v2879_v37 }
0x1446   :  { %2880 = vrcp.f32 %v1119_v39 }
0x1450   :  { %v2881_v40 = vpop.eup %2880 }
0x1451   :  { %v1133_v52 = vsub.f32 1.0, %v2881_v40  ;;  %v1139_v55 = vmul.f32 %v2881_v40, %v1033_v26 }
0x14a7   :  { %v1124_v9 = vpop.permute.xlu1 %1123 }
0x14a8   :  { %v1126_v41 = vmul.f32 %v2881_v40, %v1124_v9 }
0x14aa   :  { %1128 = vrot.lane.b32.xlu1 %v1126_v41, %s3065_s6 }
0x151c   :  { %v1129_v17 = vpop.permute.xlu1 %1128 }
0x151d   :  { %v1131_v42 = vadd.f32 %v1129_v17, %v1114_v34 }
0x151f   :  { %2882 = vtanh.f32 %v1131_v42 }
0x1529   :  { %v2883_v50 = vpop.eup %2882 }
0x152a   :  { %1135 = vrot.lane.b32.xlu0 %v2883_v50, %s3067_s7 }
0x152e   :  { %1380 = vperm.xlu0 %2826, %v3448_v51  }
0x1532   :  { %2827 = vset.pattern.permute.xlu0 %v3066_v38  ;;  %v3460_v38 = vld [vmem:[#allocation10] ss:$0 sm:$0xff] }
0x159c   :  { %v1136_v53 = vpop.permute.xlu0 %1135 }
0x159d   :  { %v1138_v56 = vmul.f32 %v1136_v53, %v1133_v52 }
0x159f   :  { %v1140_v57 = vadd.f32 %v1139_v55, %v1138_v56 }
0x15a1   :  { %1304 = vrot.lane.b32.xlu1 %v1140_v57, %s3067_s7 }
0x15ad   :  { %v1381_v10 = vpop.permute.xlu0 %1380 }
0x15ae   :  { %v1387_v15 = vmul.f32 %v3465_v6, %v1381_v10 }
0x15b0   :  { %v1392_v16 = vadd.f32 %v3468_v13, %v1387_v15 }
0x1613   :  { %v1305_v63 = vpop.permute.xlu1 %1304 }
0x1614   :  { %2606 = vmatmul.mubr.msk.f32.vlgmr.msra.gmra.mrb[10].mxu0 %vm277_vm2, %v1305_v63 }
0x1615   :  { %2758 = vmatpush3.bf16.msra.mxu0 %v3422_v45  ;;  %2627 = vmatprep.mubr.msk.f32.mxu0 %vm3062_vm0, %v3061_v0 }
0x1616   :  { %2759 = vmatprep.subr.bf16.mxu0 %v3064_v8 }
0x1619   :  { %2761 = vmatpush3.bf16.msra.mxu0 %v3431_v49 }
0x161a   :  { %2768 = vmatprep.subr.bf16.mxu0 %v3064_v8 }
0x16e7   :  { %v1374_v2 = vpop.f32.mrb[10].mxu0 }
0x16e8   :  { %v1375_v3 = vadd.f32 %v3460_v38, %v1374_v2  ;;  %v2607_v4 = vpop.f32.mrb[11].mxu0 }
0x16ea   :  { %1401 = vrot.lane.b32.xlu1 %v1375_v3, %s3065_s6  ;;  %v1393_v18 = vadd.f32 %v1392_v16, %v1375_v3 }
0x16ec   :  { %v2376_v19 = vmul.f32 -1.442695, %v1393_v18 }
0x16ee   :  { %2884 = vpow2.f32 %v2376_v19 }
0x16f8   :  { %v2885_v20 = vpop.eup %2884 }
0x16f9   :  { %v1397_v22 = vadd.f32 1.0, %v2885_v20 }
0x16fb   :  { %2886 = vrcp.f32 %v1397_v22 }
0x1705   :  { %v2887_v24 = vpop.eup %2886 }
0x1706   :  { %v1411_v32 = vsub.f32 1.0, %v2887_v24  ;;  %v1417_v33 = vmul.f32 %v2887_v24, %v1140_v57 }
0x175c   :  { %v1402_v26 = vpop.permute.xlu1 %1401 }
0x175d   :  { %v1404_v27 = vmul.f32 %v2887_v24, %v1402_v26 }
0x175f   :  { %1406 = vrot.lane.b32.xlu1 %v1404_v27, %s3065_s6 }
0x17d1   :  { %v1407_v29 = vpop.permute.xlu1 %1406 }
0x17d2   :  { %v1409_v31 = vadd.f32 %v1407_v29, %v1392_v16 }
0x17d4   :  { %2888 = vtanh.f32 %v1409_v31 }
0x17de   :  { %v2889_v23 = vpop.eup %2888 }
0x17df   :  { %1413 = vrot.lane.b32.xlu0 %v2889_v23, %s3067_s7 }
0x17e3   :  { %1500 = vperm.xlu0 %2827, %v3448_v51  }
0x17e7   :  { %2828 = vset.pattern.permute.xlu0 %v3068_v61 }
0x1851   :  { %v1414_v11 = vpop.permute.xlu0 %1413 }
0x1852   :  { %v1416_v34 = vmul.f32 %v1414_v11, %v1411_v32 }
0x1854   :  { %v1418_v35 = vadd.f32 %v1417_v33, %v1416_v34 }
0x1856   :  { %1420 = vrot.lane.b32.xlu1 %v1418_v35, %s3067_s7 }
0x1862   :  { %v1501_v40 = vpop.permute.xlu0 %1500 }
0x1863   :  { %v1503_v9 = vmul.f32 %v1501_v40, %v3465_v6 }
0x1865   :  { %v1504_v41 = vadd.f32 %v1503_v9, %v3468_v13 }
0x18c8   :  { %v1421_v36 = vpop.permute.xlu1 %1420 }
0x18c9   :  { %1424 = vst.msk [vmem:[#allocation2] sm:$0x1] %vm1423_vm3, %v1421_v36  ;;  %2617 = vmatmul.mubr.msk.f32.vlgmr.msra.gmra.mrb[14].mxu1 %vm277_vm2, %v1421_v36 }
0x18ca   :  { %1426 = vst.msk [vmem:[#allocation2 + $0x7] sm:$0x2] %vm1425_vm4, %v1421_v36  ;;  %2764 = vmatpush3.bf16.msra.mxu1 %v3422_v45  ;;  %2638 = vmatprep.mubr.msk.f32.mxu1 %vm3062_vm0, %v3061_v0 }
0x18cb   :  { %2765 = vmatprep.subr.bf16.mxu1 %v3064_v8 }
0x18ce   :  { %2767 = vmatpush3.bf16.msra.mxu1 %v3431_v49 }
0x18cf   :  { %2774 = vmatprep.subr.bf16.mxu1 %v3064_v8 }
0x199c   :  { %v1495_v61 = vpop.f32.mrb[14].mxu1 }
0x199d   :  { %v1496_v37 = vadd.f32 %v3460_v38, %v1495_v61  ;;  %v2618_v39 = vpop.f32.mrb[15].mxu1 }
0x199f   :  { %1513 = vrot.lane.b32.xlu1 %v1496_v37, %s3065_s6  ;;  %v1505_v17 = vadd.f32 %v1504_v41, %v1496_v37 }
0x19a1   :  { %v2378_v42 = vmul.f32 -1.442695, %v1505_v17 }
0x19a3   :  { %2890 = vpow2.f32 %v2378_v42 }
0x19ad   :  { %v2891_v25 = vpop.eup %2890 }
0x19ae   :  { %v1509_v28 = vadd.f32 1.0, %v2891_v25 }
0x19b0   :  { %2892 = vrcp.f32 %v1509_v28 }
0x19ba   :  { %v2893_v43 = vpop.eup %2892 }
0x19bb   :  { %v1523_v52 = vsub.f32 1.0, %v2893_v43  ;;  %v1529_v55 = vmul.f32 %v2893_v43, %v1418_v35 }
0x1a11   :  { %v1514_v44 = vpop.permute.xlu1 %1513 }
0x1a12   :  { %v1516_v12 = vmul.f32 %v2893_v43, %v1514_v44 }
0x1a14   :  { %1518 = vrot.lane.b32.xlu1 %v1516_v12, %s3065_s6 }
0x1a86   :  { %v1519_v46 = vpop.permute.xlu1 %1518 }
0x1a87   :  { %v1521_v48 = vadd.f32 %v1519_v46, %v1504_v41 }
0x1a89   :  { %2894 = vtanh.f32 %v1521_v48 }
0x1a93   :  { %v2895_v50 = vpop.eup %2894 }
0x1a94   :  { %1525 = vrot.lane.b32.xlu0 %v2895_v50, %s3067_s7 }
0x1a98   :  { %1610 = vperm.xlu0 %2828, %v3448_v51  }
0x1a9c   :  { %2829 = vset.pattern.permute.xlu0 %v3069_v30 }
0x1b06   :  { %v1526_v53 = vpop.permute.xlu0 %1525 }
0x1b07   :  { %v1528_v56 = vmul.f32 %v1526_v53, %v1523_v52 }
0x1b09   :  { %v1530_v57 = vadd.f32 %v1529_v55, %v1528_v56 }
0x1b0b   :  { %1532 = vrot.lane.b32.xlu1 %v1530_v57, %s3067_s7 }
0x1b17   :  { %v1611_v62 = vpop.permute.xlu0 %1610 }
0x1b18   :  { %v1613_v63 = vmul.f32 %v1611_v62, %v3465_v6 }
0x1b1a   :  { %v1614_v2 = vadd.f32 %v1613_v63, %v3468_v13 }
0x1b7d   :  { %v1533_v58 = vpop.permute.xlu1 %1532 }
0x1b7e   :  { %1535 = vst.msk [vmem:[#allocation2 + $0x1] sm:$0x1] %vm1423_vm3, %v1533_v58  ;;  %2628 = vmatmul.mubr.msk.f32.vlgmr.msra.gmra.mrb[12].mxu0 %vm277_vm2, %v1533_v58 }
0x1b7f   :  { %1536 = vst.msk [vmem:[#allocation2 + $0x8] sm:$0x2] %vm1425_vm4, %v1533_v58  ;;  %2770 = vmatpush3.bf16.msra.mxu0 %v3422_v45  ;;  %2649 = vmatprep.mubr.msk.f32.mxu0 %vm3062_vm0, %v3061_v0 }
0x1b80   :  { %2771 = vmatprep.subr.bf16.mxu0 %v3064_v8 }
0x1b83   :  { %2773 = vmatpush3.bf16.msra.mxu0 %v3431_v49 }
0x1b84   :  { %2780 = vmatprep.subr.bf16.mxu0 %v3064_v8 }
0x1c51   :  { %v1605_v30 = vpop.f32.mrb[12].mxu0 }
0x1c52   :  { %v1606_v59 = vadd.f32 %v3460_v38, %v1605_v30  ;;  %v2629_v60 = vpop.f32.mrb[13].mxu0 }
0x1c54   :  { %1623 = vrot.lane.b32.xlu1 %v1606_v59, %s3065_s6  ;;  %v1615_v3 = vadd.f32 %v1614_v2, %v1606_v59 }
0x1c56   :  { %v2380_v4 = vmul.f32 -1.442695, %v1615_v3 }
0x1c58   :  { %2896 = vpow2.f32 %v2380_v4 }
0x1c62   :  { %v2897_v5 = vpop.eup %2896 }
0x1c63   :  { %v1619_v7 = vadd.f32 1.0, %v2897_v5 }
0x1c65   :  { %2898 = vrcp.f32 %v1619_v7 }
0x1c6f   :  { %v2899_v10 = vpop.eup %2898 }
0x1c70   :  { %v1633_v22 = vsub.f32 1.0, %v2899_v10  ;;  %v1639_v26 = vmul.f32 %v2899_v10, %v1530_v57 }
0x1cc6   :  { %v1624_v15 = vpop.permute.xlu1 %1623 }
0x1cc7   :  { %v1626_v16 = vmul.f32 %v2899_v10, %v1624_v15 }
0x1cc9   :  { %1628 = vrot.lane.b32.xlu1 %v1626_v16, %s3065_s6 }
0x1d3b   :  { %v1629_v18 = vpop.permute.xlu1 %1628 }
0x1d3c   :  { %v1631_v19 = vadd.f32 %v1629_v18, %v1614_v2 }
0x1d3e   :  { %2900 = vtanh.f32 %v1631_v19 }
0x1d48   :  { %v2901_v20 = vpop.eup %2900 }
0x1d49   :  { %1635 = vrot.lane.b32.xlu0 %v2901_v20, %s3067_s7 }
0x1d4d   :  { %1720 = vperm.xlu0 %2829, %v3448_v51  }
0x1d51   :  { %2830 = vset.pattern.permute.xlu0 %v3070_v54 }
0x1dbb   :  { %v1636_v24 = vpop.permute.xlu0 %1635 }
0x1dbc   :  { %v1638_v27 = vmul.f32 %v1636_v24, %v1633_v22 }
0x1dbe   :  { %v1640_v29 = vadd.f32 %v1639_v26, %v1638_v27 }
0x1dc0   :  { %1642 = vrot.lane.b32.xlu1 %v1640_v29, %s3067_s7 }
0x1dcc   :  { %v1721_v11 = vpop.permute.xlu0 %1720 }
0x1dcd   :  { %v1723_v33 = vmul.f32 %v1721_v11, %v3465_v6 }
0x1dcf   :  { %v1724_v34 = vadd.f32 %v1723_v33, %v3468_v13 }
0x1e32   :  { %v1643_v31 = vpop.permute.xlu1 %1642 }
0x1e33   :  { %1645 = vst.msk [vmem:[#allocation2 + $0x2] sm:$0x1] %vm1423_vm3, %v1643_v31  ;;  %2639 = vmatmul.mubr.msk.f32.vlgmr.msra.gmra.mrb[16].mxu1 %vm277_vm2, %v1643_v31 }
0x1e34   :  { %1646 = vst.msk [vmem:[#allocation2 + $0x9] sm:$0x2] %vm1425_vm4, %v1643_v31  ;;  %2776 = vmatpush3.bf16.msra.mxu1 %v3422_v45  ;;  %2660 = vmatprep.mubr.msk.f32.mxu1 %vm3062_vm0, %v3061_v0 }
0x1e35   :  { %2777 = vmatprep.subr.bf16.mxu1 %v3064_v8 }
0x1e38   :  { %2779 = vmatpush3.bf16.msra.mxu1 %v3431_v49 }
0x1e39   :  { %2786 = vmatprep.subr.bf16.mxu1 %v3064_v8 }
0x1f06   :  { %v1715_v54 = vpop.f32.mrb[16].mxu1 }
0x1f07   :  { %v1716_v23 = vadd.f32 %v3460_v38, %v1715_v54  ;;  %v2640_v32 = vpop.f32.mrb[17].mxu1 }
0x1f09   :  { %1733 = vrot.lane.b32.xlu1 %v1716_v23, %s3065_s6  ;;  %v1725_v35 = vadd.f32 %v1724_v34, %v1716_v23 }
0x1f0b   :  { %v2382_v36 = vmul.f32 -1.442695, %v1725_v35 }
0x1f0d   :  { %2902 = vpow2.f32 %v2382_v36 }
0x1f17   :  { %v2903_v61 = vpop.eup %2902 }
0x1f18   :  { %v1729_v37 = vadd.f32 1.0, %v2903_v61 }
0x1f1a   :  { %2904 = vrcp.f32 %v1729_v37 }
0x1f24   :  { %v2905_v39 = vpop.eup %2904 }
0x1f25   :  { %v1743_v25 = vsub.f32 1.0, %v2905_v39  ;;  %v1749_v43 = vmul.f32 %v2905_v39, %v1640_v29 }
0x1f7b   :  { %v1734_v40 = vpop.permute.xlu1 %1733 }
0x1f7c   :  { %v1736_v9 = vmul.f32 %v2905_v39, %v1734_v40 }
0x1f7e   :  { %1738 = vrot.lane.b32.xlu1 %v1736_v9, %s3065_s6 }
0x1ff0   :  { %v1739_v41 = vpop.permute.xlu1 %1738 }
0x1ff1   :  { %v1741_v17 = vadd.f32 %v1739_v41, %v1724_v34 }
0x1ff3   :  { %2906 = vtanh.f32 %v1741_v17 }
0x1ffd   :  { %v2907_v42 = vpop.eup %2906 }
0x1ffe   :  { %1745 = vrot.lane.b32.xlu0 %v2907_v42, %s3067_s7 }
0x2002   :  { %1830 = vperm.xlu0 %2830, %v3448_v51  }
0x2006   :  { %2831 = vset.pattern.permute.xlu0 %v3071_v21 }
0x2070   :  { %v1746_v28 = vpop.permute.xlu0 %1745 }
0x2071   :  { %v1748_v44 = vmul.f32 %v1746_v28, %v1743_v25 }
0x2073   :  { %v1750_v12 = vadd.f32 %v1749_v43, %v1748_v44 }
0x2075   :  { %1752 = vrot.lane.b32.xlu1 %v1750_v12, %s3067_s7 }
0x2081   :  { %v1831_v52 = vpop.permute.xlu0 %1830 }
0x2082   :  { %v1833_v53 = vmul.f32 %v1831_v52, %v3465_v6 }
0x2084   :  { %v1834_v55 = vadd.f32 %v1833_v53, %v3468_v13 }
0x20e7   :  { %v1753_v46 = vpop.permute.xlu1 %1752 }
0x20e8   :  { %1755 = vst.msk [vmem:[#allocation2 + $0x3] sm:$0x1] %vm1423_vm3, %v1753_v46  ;;  %2650 = vmatmul.mubr.msk.f32.vlgmr.msra.gmra.mrb[14].mxu0 %vm277_vm2, %v1753_v46 }
0x20e9   :  { %1756 = vst.msk [vmem:[#allocation2 + $0xa] sm:$0x2] %vm1425_vm4, %v1753_v46  ;;  %2782 = vmatpush3.bf16.msra.mxu0 %v3422_v45  ;;  %2671 = vmatprep.mubr.msk.f32.mxu0 %vm3062_vm0, %v3061_v0 }
0x20ea   :  { %2783 = vmatprep.subr.bf16.mxu0 %v3064_v8 }
0x20ed   :  { %2785 = vmatpush3.bf16.msra.mxu0 %v3431_v49 }
0x21bb   :  { %v1825_v21 = vpop.f32.mrb[14].mxu0 }
0x21bc   :  { %v1826_v48 = vadd.f32 %v3460_v38, %v1825_v21  ;;  %v2651_v50 = vpop.f32.mrb[15].mxu0 }
0x21be   :  { %1843 = vrot.lane.b32.xlu1 %v1826_v48, %s3065_s6  ;;  %v1835_v56 = vadd.f32 %v1834_v55, %v1826_v48 }
0x21c0   :  { %v2384_v57 = vmul.f32 -1.442695, %v1835_v56 }
0x21c2   :  { %2908 = vpow2.f32 %v2384_v57 }
0x21cc   :  { %v2909_v58 = vpop.eup %2908 }
0x21cd   :  { %v1839_v30 = vadd.f32 1.0, %v2909_v58 }
0x21cf   :  { %2910 = vrcp.f32 %v1839_v30 }
0x21d9   :  { %v2911_v59 = vpop.eup %2910 }
0x21da   :  { %v1853_v4 = vsub.f32 1.0, %v2911_v59  ;;  %v1859_v7 = vmul.f32 %v2911_v59, %v1750_v12 }
0x2230   :  { %v1844_v60 = vpop.permute.xlu1 %1843 }
0x2231   :  { %v1846_v62 = vmul.f32 %v2911_v59, %v1844_v60 }
0x2233   :  { %1848 = vrot.lane.b32.xlu1 %v1846_v62, %s3065_s6 }
0x22a5   :  { %v1849_v63 = vpop.permute.xlu1 %1848 }
0x22a6   :  { %v1851_v2 = vadd.f32 %v1849_v63, %v1834_v55 }
0x22a8   :  { %2912 = vtanh.f32 %v1851_v2 }
0x22b2   :  { %v2913_v3 = vpop.eup %2912 }
0x22b3   :  { %1855 = vrot.lane.b32.xlu0 %v2913_v3, %s3067_s7 }
0x22b7   :  { %1940 = vperm.xlu0 %2831, %v3448_v51  }
0x22bb   :  { %2832 = vset.pattern.permute.xlu0 %v3072_v47 }
0x2325   :  { %v1856_v5 = vpop.permute.xlu0 %1855 }
0x2326   :  { %v1858_v10 = vmul.f32 %v1856_v5, %v1853_v4 }
0x2328   :  { %v1860_v15 = vadd.f32 %v1859_v7, %v1858_v10 }
0x232a   :  { %1862 = vrot.lane.b32.xlu1 %v1860_v15, %s3067_s7 }
0x2336   :  { %v1941_v20 = vpop.permute.xlu0 %1940 }
0x2337   :  { %v1943_v22 = vmul.f32 %v1941_v20, %v3465_v6 }
0x2339   :  { %v1944_v24 = vadd.f32 %v1943_v22, %v3468_v13 }
0x239c   :  { %v1863_v16 = vpop.permute.xlu1 %1862 }
0x239d   :  { %1865 = vst.msk [vmem:[#allocation2 + $0x4] sm:$0x1] %vm1423_vm3, %v1863_v16  ;;  %2661 = vmatmul.mubr.msk.f32.vlgmr.msra.gmra.mrb[18].mxu1 %vm277_vm2, %v1863_v16 }
0x239e   :  { %1866 = vst.msk [vmem:[#allocation2 + $0xb] sm:$0x2] %vm1425_vm4, %v1863_v16  ;;  %2788 = vmatpush3.bf16.msra.mxu1 %v3422_v45  ;;  %2682 = vmatprep.mubr.msk.f32.mxu1 %vm3062_vm0, %v3061_v0  ;;  %v2199_v16 = vld [vmem:[%s3639_s15 + $0x10] sm:$0xff] }
0x239f   :  { %2789 = vmatprep.subr.bf16.mxu1 %v3064_v8 }
0x23a2   :  { %2791 = vmatpush3.bf16.msra.mxu1 %v3431_v49 }
0x2470   :  { %v1935_v47 = vpop.f32.mrb[18].mxu1 }
0x2471   :  { %v1936_v18 = vadd.f32 %v3460_v38, %v1935_v47  ;;  %v2662_v19 = vpop.f32.mrb[19].mxu1  ;;  %v2200_v47 = vld [vmem:[%s3639_s15 + $0x18] sm:$0xff] }
0x2473   :  { %1953 = vrot.lane.b32.xlu1 %v1936_v18, %s3065_s6  ;;  %v1945_v26 = vadd.f32 %v1944_v24, %v1936_v18  ;;  %v2796_v18 = vpack.c.bf16 %v2200_v47, %v2199_v16 }
0x2475   :  { %v2386_v45 = vmul.f32 -1.442695, %v1945_v26  ;;  %v2291_v26 = vld [vmem:[%s3626_s2] sm:$0xff] }
0x2477   :  { %2914 = vpow2.f32 %v2386_v45 }
0x2481   :  { %v2915_v27 = vpop.eup %2914 }
0x2482   :  { %v1949_v0 = vadd.f32 1.0, %v2915_v27  ;;  %v2292_v27 = vld [vmem:[%s3626_s2 + $0x8] sm:$0xff] }
0x2484   :  { %2916 = vrcp.f32 %v1949_v0 }
0x248e   :  { %v2917_v8 = vpop.eup %2916 }
0x248f   :  { %v1963_v32 = vsub.f32 1.0, %v2917_v8  ;;  %v1969_v33 = vmul.f32 %v2917_v8, %v1860_v15 }
0x24e5   :  { %v1954_v29 = vpop.permute.xlu1 %1953 }
0x24e6   :  { %v1956_v49 = vmul.f32 %v2917_v8, %v1954_v29 }
0x24e8   :  { %1958 = vrot.lane.b32.xlu1 %v1956_v49, %s3065_s6  ;;  %v2391_v49 = vld [vmem:[%s3640_s16] ss:$0 sm:$0xff] }
0x255a   :  { %v1959_v31 = vpop.permute.xlu1 %1958 }
0x255b   :  { %v1961_v54 = vadd.f32 %v1959_v31, %v1944_v24 }
0x255d   :  { %2918 = vtanh.f32 %v1961_v54 }
0x2567   :  { %v2919_v23 = vpop.eup %2918 }
0x2568   :  { %1965 = vrot.lane.b32.xlu0 %v2919_v23, %s3067_s7 }
0x256c   :  { %2050 = vperm.xlu0 %2832, %v3448_v51  }
0x2570   :  { %2833 = vset.pattern.permute.xlu0 %v3073_v14 }
0x25da   :  { %v1966_v11 = vpop.permute.xlu0 %1965 }
0x25db   :  { %v1968_v34 = vmul.f32 %v1966_v11, %v1963_v32 }
0x25dd   :  { %v1970_v35 = vadd.f32 %v1969_v33, %v1968_v34 }
0x25df   :  { %1972 = vrot.lane.b32.xlu1 %v1970_v35, %s3067_s7 }
0x25eb   :  { %v2051_v14 = vpop.permute.xlu0 %2050 }
0x25ec   :  { %v2053_v40 = vmul.f32 %v2051_v14, %v3465_v6 }
0x25ee   :  { %v2054_v9 = vadd.f32 %v2053_v40, %v3468_v13 }
0x2651   :  { %v1973_v36 = vpop.permute.xlu1 %1972 }
0x2652   :  { %1975 = vst.msk [vmem:[#allocation2 + $0x5] sm:$0x1] %vm1423_vm3, %v1973_v36  ;;  %2672 = vmatmul.mubr.msk.f32.vlgmr.msra.gmra.mrb[16].mxu0 %vm277_vm2, %v1973_v36 }
0x2653   :  { %1976 = vst.msk [vmem:[#allocation2 + $0xc] sm:$0x2] %vm1425_vm4, %v1973_v36 }
0x2725   :  { %v2045_v61 = vpop.f32.mrb[16].mxu0 }
0x2726   :  { %v2046_v37 = vadd.f32 %v3460_v38, %v2045_v61  ;;  %v2673_v39 = vpop.f32.mrb[17].mxu0 }
0x2728   :  { %2063 = vrot.lane.b32.xlu1 %v2046_v37, %s3065_s6  ;;  %v2055_v41 = vadd.f32 %v2054_v9, %v2046_v37 }
0x272a   :  { %v2388_v17 = vmul.f32 -1.442695, %v2055_v41 }
0x272c   :  { %2920 = vpow2.f32 %v2388_v17 }
0x2736   :  { %v2921_v42 = vpop.eup %2920 }
0x2737   :  { %v2059_v25 = vadd.f32 1.0, %v2921_v42 }
0x2739   :  { %2922 = vrcp.f32 %v2059_v25 }
0x2743   :  { %v2923_v28 = vpop.eup %2922 }
0x2744   :  { %v2073_v48 = vsub.f32 1.0, %v2923_v28  ;;  %v2079_v52 = vmul.f32 %v2923_v28, %v1970_v35 }
0x279a   :  { %v2064_v43 = vpop.permute.xlu1 %2063 }
0x279b   :  { %v2066_v44 = vmul.f32 %v2923_v28, %v2064_v43 }
0x279d   :  { %2068 = vrot.lane.b32.xlu1 %v2066_v44, %s3065_s6 }
0x280f   :  { %v2069_v12 = vpop.permute.xlu1 %2068 }
0x2810   :  { %v2071_v46 = vadd.f32 %v2069_v12, %v2054_v9 }
0x2812   :  { %2924 = vtanh.f32 %v2071_v46 }
0x281c   :  { %v2925_v21 = vpop.eup %2924 }
0x281d   :  { %2075 = vrot.lane.b32.xlu0 %v2925_v21, %s3067_s7 }
0x2821   :  { %2160 = vperm.xlu0 %2833, %v3448_v51  }
0x2825   :  { %2834 = vset.pattern.permute.xlu0 %v3063_v1 }
0x288f   :  { %v2076_v50 = vpop.permute.xlu0 %2075 }
0x2890   :  { %v2078_v53 = vmul.f32 %v2076_v50, %v2073_v48 }
0x2892   :  { %v2080_v55 = vadd.f32 %v2079_v52, %v2078_v53 }
0x2894   :  { %2082 = vrot.lane.b32.xlu1 %v2080_v55, %s3067_s7 }
0x28a0   :  { %v2161_v1 = vpop.permute.xlu0 %2160 }
0x28a1   :  { %v2163_v30 = vmul.f32 %v2161_v1, %v3465_v6  ;;  %v2197_v6 = vld [vmem:[%s3639_s15] sm:$0xff] }
0x28a3   :  { %v2164_v59 = vadd.f32 %v2163_v30, %v3468_v13  ;;  %v2198_v13 = vld [vmem:[%s3639_s15 + $0x8] sm:$0xff] }
0x28a4   :  { %v2792_v15 = vpack.c.bf16 %v2198_v13, %v2197_v6 }
0x28a6   :  { %2793 = vmatprep.subr.bf16.mxu0 %v2792_v15 }
0x28a7   :  { %2795 = vmatpush3.bf16.msra.mxu0 %v2792_v15 }
0x28a8   :  { %2797 = vmatprep.subr.bf16.mxu0 %v2796_v18 }
0x28ab   :  { %2799 = vmatpush3.bf16.msra.mxu0 %v2796_v18 }
0x2906   :  { %v2083_v56 = vpop.permute.xlu1 %2082 }
0x2907   :  { %2085 = vst.msk [vmem:[#allocation2 + $0x6] sm:$0x1] %vm1423_vm3, %v2083_v56  ;;  %2683 = vmatmul.mubr.msk.f32.vlgmr.msra.gmra.mrb[20].mxu1 %vm277_vm2, %v2083_v56 }
0x2908   :  { %2086 = vst.msk [vmem:[#allocation2 + $0xd] sm:$0x2] %vm1425_vm4, %v2083_v56 }
0x29da   :  { %v2155_v57 = vpop.f32.mrb[20].mxu1 }
0x29db   :  { %v2156_v58 = vadd.f32 %v3460_v38, %v2155_v57  ;;  %v2684_v51 = vpop.f32.mrb[21].mxu1 }
0x29dd   :  { %2173 = vrot.lane.b32.xlu1 %v2156_v58, %s3065_s6  ;;  %v2165_v60 = vadd.f32 %v2164_v59, %v2156_v58 }
0x29df   :  { %v2390_v62 = vmul.f32 -1.442695, %v2165_v60 }
0x29e1   :  { %2926 = vpow2.f32 %v2390_v62 }
0x29eb   :  { %v2927_v63 = vpop.eup %2926 }
0x29ec   :  { %v2169_v2 = vadd.f32 1.0, %v2927_v63 }
0x29ee   :  { %2928 = vrcp.f32 %v2169_v2 }
0x29f8   :  { %v2929_v3 = vpop.eup %2928 }
0x29f9   :  { %v2183_v19 = vsub.f32 1.0, %v2929_v3  ;;  %v2189_v22 = vmul.f32 %v2929_v3, %v2080_v55 }
0x2a4f   :  { %v2174_v4 = vpop.permute.xlu1 %2173 }
0x2a50   :  { %v2176_v5 = vmul.f32 %v2929_v3, %v2174_v4 }
0x2a52   :  { %2178 = vrot.lane.b32.xlu1 %v2176_v5, %s3065_s6 }
0x2ac4   :  { %v2179_v38 = vpop.permute.xlu1 %2178 }
0x2ac5   :  { %v2181_v7 = vadd.f32 %v2179_v38, %v2164_v59 }
0x2ac7   :  { %2930 = vtanh.f32 %v2181_v7 }
0x2ad1   :  { %v2931_v10 = vpop.eup %2930 }
0x2ad2   :  { %2185 = vrot.lane.b32.xlu0 %v2931_v10, %s3067_s7 }
0x2ad6   :  { %2295 = vperm.xlu0 %2834, %v2291_v26  }
0x2b44   :  { %v2186_v20 = vpop.permute.xlu0 %2185 }
0x2b45   :  { %v2188_v24 = vmul.f32 %v2186_v20, %v2183_v19 }
0x2b47   :  { %v2190_v45 = vadd.f32 %v2189_v22, %v2188_v24 }
0x2b49   :  { %2192 = vrot.lane.b32.xlu1 %v2190_v45, %s3067_s7 }
0x2b4d   :  { %2300 = vperm.xlu1 %2835, %v2292_v27  }
0x2b55   :  { %v2296_v11 = vpop.permute.xlu0 %2295 }
0x2bbb   :  { %v2193_v0 = vpop.permute.xlu1 %2192 }
0x2bbc   :  { %2195 = vst.msk [vmem:[#allocation2 + $0x7] sm:$0x1] %vm1423_vm3, %v2193_v0 }
0x2bbd   :  { %2196 = vst.msk [vmem:[#allocation2 + $0xe] sm:$0x2] %vm1425_vm4, %v2193_v0 }
0x2bc3   :  { %v2202_v8 = vld [vmem:[#allocation2] sm:$0xff] }
0x2bc4   :  { %v2203_v29 = vld [vmem:[#allocation2 + $0x8] sm:$0xff]  ;;  %2693 = vmatprep.mubr.msk.f32.mxu0 %vm277_vm2, %v2202_v8 }
0x2bc5   :  { %2694 = vmatmul.mubr.msk.f32.vlgmr.msra.gmra.mrb[18].mxu0 %vm277_vm2, %v2203_v29 }
0x2bcc   :  { %v2301_v54 = vpop.permute.xlu1 %2300 }
0x2c98   :  { %v2695_v31 = vpop.f32.mrb[18].mxu0 }
0x2c99   :  { %v2288_v23 = vadd.f32 %v2695_v31, %v2391_v49  ;;  %v2282_v32 = vpop.f32.mrb[19].mxu0 }
0x2c9a   :  { %v2283_v33 = vadd.f32 %v2391_v49, %v2282_v32 }
0x2c9b   :  { %v2304_v34 = vmul.f32 %v2301_v54, %v2288_v23 }
0x2c9c   :  { %v2303_v35 = vmul.f32 %v2296_v11, %v2283_v33 }
0x2c9d   :  { %v2326_v36 = vsel %vm2305_vm5, %v2304_v34, -inf }
0x2c9e   :  { %v2327_v61 = vrot.slane %v2326_v36, 4  ;;  %v2306_v37 = vsel %vm2305_vm5, %v2303_v35, -inf }
0x2c9f   :  { %v2307_v39 = vrot.slane %v2306_v37, 4 }
0x2ca0   :  { %v2328_v14 = vmax.f32 %v2326_v36, %v2327_v61 }
0x2ca1   :  { %v2308_v40 = vmax.f32 %v2306_v37, %v2307_v39 }
0x2ca2   :  { %v2329_v9 = vrot.slane %v2328_v14, 2 }
0x2ca3   :  { %v2309_v41 = vrot.slane %v2308_v40, 2 }
0x2ca4   :  { %v2330_v17 = vmax.f32 %v2328_v14, %v2329_v9 }
0x2ca5   :  { %v2310_v42 = vmax.f32 %v2308_v40, %v2309_v41 }
0x2ca6   :  { %v2331_v25 = vrot.slane %v2330_v17, 1 }
0x2ca7   :  { %v2311_v28 = vrot.slane %v2310_v42, 1 }
0x2ca8   :  { %v2332_v43 = vmax.f32 %v2330_v17, %v2331_v25 }
0x2ca9   :  { %v2312_v44 = vmax.f32 %v2310_v42, %v2311_v28 }
0x2caa   :  { %v2333_v12 = vsub.f32 %v2304_v34, %v2332_v43 }
0x2cab   :  { %v2313_v46 = vsub.f32 %v2303_v35, %v2312_v44 }
0x2cac   :  { %v2334_v21 = vmul.f32 1.442695, %v2333_v12 }
0x2cad   :  { %v2314_v48 = vmul.f32 1.442695, %v2313_v46 }
0x2cae   :  { %2932 = vpow2.f32 %v2334_v21 }
0x2caf   :  { %2934 = vpow2.f32 %v2314_v48 }
0x2cb8   :  { %v2933_v50 = vpop.eup %2932 }
0x2cb9   :  { %v2935_v52 = vpop.eup %2934  ;;  %v2336_v53 = vsel %vm2305_vm5, %v2933_v50, 0.0 }
0x2cba   :  { %v2337_v55 = vrot.slane %v2336_v53, 4  ;;  %v2316_v56 = vsel %vm2305_vm5, %v2935_v52, 0.0 }
0x2cbb   :  { %v2317_v57 = vrot.slane %v2316_v56, 4 }
0x2cbc   :  { %v2338_v58 = vadd.f32 %v2337_v55, %v2336_v53 }
0x2cbd   :  { %v2318_v51 = vadd.f32 %v2317_v57, %v2316_v56 }
0x2cbe   :  { %v2339_v1 = vrot.slane %v2338_v58, 2 }
0x2cbf   :  { %v2319_v30 = vrot.slane %v2318_v51, 2 }
0x2cc0   :  { %v2340_v59 = vadd.f32 %v2339_v1, %v2338_v58 }
0x2cc1   :  { %v2320_v60 = vadd.f32 %v2319_v30, %v2318_v51 }
0x2cc2   :  { %v2341_v62 = vrot.slane %v2340_v59, 1 }
0x2cc3   :  { %v2321_v63 = vrot.slane %v2320_v60, 1 }
0x2cc4   :  { %v2342_v2 = vadd.f32 %v2341_v62, %v2340_v59 }
0x2cc5   :  { %v2322_v3 = vadd.f32 %v2321_v63, %v2320_v60 }
0x2cc6   :  { %2936 = vrcp.f32 %v2342_v2 }
0x2cc7   :  { %2938 = vrcp.f32 %v2322_v3 }
0x2cd0   :  { %v2937_v4 = vpop.eup %2936 }
0x2cd1   :  { %v2939_v5 = vpop.eup %2938  ;;  %v2344_v38 = vmul.f32 %v2937_v4, %v2933_v50 }
0x2cd2   :  { %v2324_v7 = vmul.f32 %v2939_v5, %v2935_v52 }
0x2cd3   :  { %2394 = vst.msk [vmem:[%s3641_s17 + $0x8] sm:$0xff] %vm2305_vm5, %v2344_v38 }
0x2cd4   :  { %2325 = vst.msk [vmem:[%s3641_s17] sm:$0xff] %vm2305_vm5, %v2324_v7 }
0x2cd5   :  { %2351 = vsyncpa [#allocation4], 1 }
0x2cd6   :  { %2352 = vsyncpa [#allocation6], 1 }
0x2cd7   :  { %2353 = vsyncpa [#allocation9], 1 }

</bundles_post_ra>
